<compile_context>
chip_gen: v6e
topology: v6e:2x2x1
jax: 0.10.0
libtpu: 0.0.40
codegen_flags: <defaults>
</compile_context>

<pallas_src>
import functools

import jax
import jax.numpy as jnp
from jax import lax
from jax.experimental import pallas as pl
from jax.experimental.pallas import tpu as pltpu

PAD_token = 0


def _round_up(x, m):
    return (x + m - 1) // m * m


# ----------------------------------------------------------------------------
# Fused bidirectional GRU kernel.
# grid = (2 directions, num_time_blocks). Time blocks are sequential ("arbitrary"),
# directions are independent ("parallel", sharded across TensorCores on v7x).
# ----------------------------------------------------------------------------
def bigru_kernel(x_ref, wi_ref, wh_ref, bi_ref, bhn_ref,   # inputs
                 out_ref, hfin_ref,                         # outputs
                 h_scratch, gi_scratch,                     # scratch
                 *, seq_len, tc, hp, time_padded):
    d = pl.program_id(0)          # direction: 0 = forward, 1 = backward
    tb = pl.program_id(1)         # time-block index (processing order)
    nb = pl.num_programs(1)

    @pl.when(tb == 0)
    def _():
        h_scratch[...] = jnp.zeros_like(h_scratch)

    # ---- hoisted input projection for the whole time block -------------------
    # (Tc, Bp, Hp) -> (Tc*Bp, Hp) @ (Hp, 3Hp): one MXU-friendly GEMM per block.
    # bi already contains bir+bhr | biz+bhz | bin.
    x_blk = x_ref[...]                                          # bf16
    tcb, bp, _ = x_blk.shape
    gi_scratch[...] = (
        jnp.dot(x_blk.reshape(tcb * bp, hp), wi_ref[0],
                preferred_element_type=jnp.float32)             # (Tc*Bp, 3Hp) f32
        + bi_ref[0])

    wh = wh_ref[0]                                              # (Hp, 3Hp) bf16
    bhn = bhn_ref[0]                                            # (1, Hp) f32

    # actual time-block read by the index_map (reversed for the backward direction)
    blk_read = tb + d * (nb - 1 - 2 * tb)

    def step(i, carry):
        # in-block row: forward processes i, backward processes tc-1-i
        row = i + d * (tc - 1 - 2 * i)
        h = h_scratch[...]                                      # (Bp, Hp) f32
        gh = jnp.dot(h.astype(wh.dtype), wh,
                     preferred_element_type=jnp.float32)        # (Bp, 3Hp) f32
        gi_t = gi_scratch[pl.ds(pl.multiple_of(row * bp, bp), bp)]   # (Bp, 3Hp)

        r = jax.nn.sigmoid(gi_t[:, 0 * hp:1 * hp] + gh[:, 0 * hp:1 * hp])
        z = jax.nn.sigmoid(gi_t[:, 1 * hp:2 * hp] + gh[:, 1 * hp:2 * hp])
        n = jnp.tanh(gi_t[:, 2 * hp:3 * hp] + r * (gh[:, 2 * hp:3 * hp] + bhn))
        h_new = (1.0 - z) * n + z * h

        if time_padded:                                         # static flag
            t_global = blk_read * tc + row
            h_new = jnp.where(t_global < seq_len, h_new, h)

        h_scratch[...] = h_new
        out_ref[row] = h_new.astype(out_ref.dtype)
        return carry

    lax.fori_loop(0, tc, step, 0, unroll=True)

    @pl.when(tb == nb - 1)
    def _():
        hfin_ref[0] = h_scratch[...].astype(hfin_ref.dtype)


def bidirectional_gru(x_pad, wi, wh, bi, bhn, *, seq_len, tc):
    """x_pad: (Tp, Bp, Hp) bf16 time-major. Returns (outputs (Tp,Bp,2Hp) f32, h_final (2,Bp,Hp) f32)."""
    tp, bp, hp = x_pad.shape
    nb = tp // tc

    def x_map(di, ti):          # reversed block order for the backward direction
        return (ti + di * (nb - 1 - 2 * ti), 0, 0)

    def out_map(di, ti):        # same time block; lane half selected by direction
        return (ti + di * (nb - 1 - 2 * ti), 0, di)

    kernel = functools.partial(bigru_kernel, seq_len=seq_len, tc=tc, hp=hp,
                               time_padded=(tp != seq_len))

    outputs, h_final = pl.pallas_call(
        kernel,
        out_shape=(jax.ShapeDtypeStruct((tp, bp, 2 * hp), jnp.float32),
                   jax.ShapeDtypeStruct((2, bp, hp), jnp.float32)),
        grid_spec=pltpu.PrefetchScalarGridSpec(
            num_scalar_prefetch=0,
            grid=(2, nb),
            in_specs=[
                pl.BlockSpec((tc, bp, hp), x_map),                       # x block
                pl.BlockSpec((1, hp, 3 * hp), lambda di, ti: (di, 0, 0)),  # Wi_cat
                pl.BlockSpec((1, hp, 3 * hp), lambda di, ti: (di, 0, 0)),  # Wh_cat
                pl.BlockSpec((1, 1, 3 * hp), lambda di, ti: (di, 0, 0)),   # fused input bias
                pl.BlockSpec((1, 1, hp), lambda di, ti: (di, 0, 0)),       # bhn
            ],
            out_specs=[
                pl.BlockSpec((tc, bp, hp), out_map),                       # outputs (lane half)
                pl.BlockSpec((1, bp, hp), lambda di, ti: (di, 0, 0)),      # final hidden per dir
            ],
            scratch_shapes=[pltpu.VMEM((bp, hp), jnp.float32),             # carried hidden
                            pltpu.VMEM((tc * bp, 3 * hp), jnp.float32)]),  # hoisted input proj
        compiler_params=pltpu.CompilerParams(
            dimension_semantics=("parallel", "arbitrary")),
    )(x_pad, wi, wh, bi, bhn)
    return outputs, h_final


# ----------------------------------------------------------------------------
# Final projection kernel: hidden = tanh(cat(h_fwd, h_bwd) @ W^T + b)
# ----------------------------------------------------------------------------
def proj_kernel(hcat_ref, w_ref, b_ref, out_ref):
    out_ref[...] = jnp.tanh(
        jnp.dot(hcat_ref[...], w_ref[...], preferred_element_type=jnp.float32)
        + b_ref[...])


def project_hidden(h_cat, w_t, b):
    bp = h_cat.shape[0]
    hp = w_t.shape[1]
    return pl.pallas_call(
        proj_kernel,
        out_shape=jax.ShapeDtypeStruct((bp, hp), jnp.float32),
        grid=(1,),
        in_specs=[pl.BlockSpec(h_cat.shape, lambda i: (0, 0)),
                  pl.BlockSpec(w_t.shape, lambda i: (0, 0)),
                  pl.BlockSpec(b.shape, lambda i: (0, 0))],
        out_specs=pl.BlockSpec((bp, hp), lambda i: (0, 0)),
    )(h_cat, w_t, b)


# ----------------------------------------------------------------------------
# Full EncoderRNN forward
# ----------------------------------------------------------------------------
def encoder_rnn_forward(src, packed, *, hidden_size):
    """src: (B, L) int32 token ids. Returns (outputs (L,B,2H), hidden (1,B,H))."""
    H = hidden_size
    Hp = packed["wi"].shape[1]           # padded hidden (static)
    B, L = src.shape
    Bp = _round_up(B, 8)
    Tc = L if L <= 32 else 32            # time-block size
    Tp = _round_up(L, Tc)

    emb = jnp.take(packed["embedding"], src, axis=0)          # (B, L, H) glue gather
    # TODO(synk): nn.Dropout(0.1) treated as eval-mode identity (no stochastic mask).
    emb = jnp.transpose(emb, (1, 0, 2))                       # (L, B, H) time-major

    # pad to lane/sublane tiles; matmul operands in bf16
    x_pad = jnp.zeros((Tp, Bp, Hp), jnp.bfloat16)
    x_pad = x_pad.at[:L, :B, :H].set(emb.astype(jnp.bfloat16))

    out_p, hfin_p = bidirectional_gru(
        x_pad, packed["wi"], packed["wh"], packed["bi"], packed["bhn"],
        seq_len=L, tc=Tc)

    # strip padding; the two directions already occupy the two lane halves
    outputs = jnp.concatenate(
        [out_p[:L, :B, :H], out_p[:L, :B, Hp:Hp + H]], axis=-1)   # (L, B, 2H)

    h_cat = jnp.concatenate([hfin_p[0], hfin_p[1]], axis=-1)      # (Bp, 2Hp)
    hidden_p = project_hidden(h_cat.astype(jnp.bfloat16),
                              packed["w_hidden_t"], packed["b_hidden"])
    hidden = hidden_p[:B, :H][None, :, :]                         # (1, B, H)
    return outputs, hidden


# ----------------------------------------------------------------------------
# Parameter init (logical shapes match nn.Embedding / nn.GRU / nn.Linear) + packing
# ----------------------------------------------------------------------------
def init_params(key, vocab_size, hidden_size):
    H = hidden_size
    keys = jax.random.split(key, 5)

    emb = jax.random.normal(keys[0], (vocab_size, H), jnp.float32)
    emb = emb.at[PAD_token].set(0.0)                     # padding_idx row zeroed

    scale = 1.0 / (H ** 0.5)

    def u(k, shape):
        return jax.random.uniform(k, shape, jnp.float32, -scale, scale)

    def gru_params(k):
        ks = jax.random.split(k, 12)
        wir, wiz, win = (u(ks[i], (H, H)) for i in range(3))
        whr, whz, whn = (u(ks[3 + i], (H, H)) for i in range(3))
        bir, biz, bin_ = (u(ks[6 + i], (1, H)) for i in range(3))
        bhr, bhz, bhn = (u(ks[9 + i], (1, H)) for i in range(3))
        return (wir, wiz, win, whr, whz, whn, bir, biz, bin_, bhr, bhz, bhn)

    return {
        "embedding": emb,
        "gru_fwd": gru_params(keys[1]),
        "gru_bwd": gru_params(keys[2]),
        "w_hidden_t": u(keys[3], (2 * H, H)),   # nn.Linear(2H, H) weight, pre-transposed
        "b_hidden": u(keys[4], (1, H)),
    }


def pack_params(params, hidden_size):
    """Pad to lane tiles, fuse per-gate weights, pre-sum paired biases, cast matmul weights to bf16."""
    H = hidden_size
    Hp = _round_up(max(H, 128), 128)

    def pack_dir(p):
        (wir, wiz, win, whr, whz, whn, bir, biz, bin_, bhr, bhz, bhn) = p
        wi = jnp.zeros((Hp, 3 * Hp), jnp.float32)
        wh = jnp.zeros((Hp, 3 * Hp), jnp.float32)
        bi = jnp.zeros((1, 3 * Hp), jnp.float32)
        bn = jnp.zeros((1, Hp), jnp.float32)
        for g, (wig, whg) in enumerate(((wir, whr), (wiz, whz), (win, whn))):
            wi = wi.at[:H, g * Hp:g * Hp + H].set(wig)
            wh = wh.at[:H, g * Hp:g * Hp + H].set(whg)
        bi = bi.at[:, 0 * Hp:0 * Hp + H].set(bir + bhr)   # r: input+hidden bias pre-summed
        bi = bi.at[:, 1 * Hp:1 * Hp + H].set(biz + bhz)   # z: input+hidden bias pre-summed
        bi = bi.at[:, 2 * Hp:2 * Hp + H].set(bin_)        # n: bhn must stay inside r*(...)
        bn = bn.at[:, :H].set(bhn)
        return wi, wh, bi, bn

    wi_f, wh_f, bi_f, bn_f = pack_dir(params["gru_fwd"])
    wi_b, wh_b, bi_b, bn_b = pack_dir(params["gru_bwd"])

    wt = params["w_hidden_t"]                      # (2H, H)
    wtp = jnp.zeros((2 * Hp, Hp), jnp.float32)
    wtp = wtp.at[:H, :H].set(wt[:H])               # forward half
    wtp = wtp.at[Hp:Hp + H, :H].set(wt[H:])        # backward half
    btp = jnp.zeros((1, Hp), jnp.float32).at[:, :H].set(params["b_hidden"])

    return {
        "embedding": params["embedding"],
        "wi": jnp.stack([wi_f, wi_b]).astype(jnp.bfloat16),   # (2, Hp, 3Hp)
        "wh": jnp.stack([wh_f, wh_b]).astype(jnp.bfloat16),   # (2, Hp, 3Hp)
        "bi": jnp.stack([bi_f, bi_b]),                        # (2, 1, 3Hp) f32
        "bhn": jnp.stack([bn_f, bn_b]),                       # (2, 1, Hp) f32
        "w_hidden_t": wtp.astype(jnp.bfloat16),               # (2Hp, Hp)
        "b_hidden": btp,                                      # (1, Hp) f32
    }


if __name__ == "__main__":
    VOCAB = 50
    HIDDEN = 32
    BATCH = 2
    SEQ = 8

    key = jax.random.PRNGKey(0)
    k_param, k_src = jax.random.split(key)
    params = init_params(k_param, VOCAB, HIDDEN)
    packed = pack_params(params, HIDDEN)
    src = jax.random.randint(k_src, (BATCH, SEQ), 0, VOCAB, dtype=jnp.int32)

    fwd = jax.jit(functools.partial(encoder_rnn_forward, packed=packed, hidden_size=HIDDEN))
    outputs, hidden = fwd(src)
    jax.block_until_ready((outputs, hidden))

    assert outputs.shape == (SEQ, BATCH, 2 * HIDDEN), outputs.shape
    assert hidden.shape == (1, BATCH, HIDDEN), hidden.shape
    assert bool(jnp.all(jnp.isfinite(outputs))) and bool(jnp.all(jnp.isfinite(hidden)))
    print("KERNEL_OK")
</pallas_src>

<mosaic_0001>
module attributes {stable_mosaic.version = 11 : i64} {
  func.func @proj_kernel(%arg0: i32, %arg1: memref<8x256xbf16, #tpu.memory_space<vmem>>, %arg2: memref<256x128xbf16, #tpu.memory_space<vmem>>, %arg3: memref<1x128xf32, #tpu.memory_space<vmem>>, %arg4: memref<8x128xf32, #tpu.memory_space<vmem>>) attributes {dimension_semantics = [#tpu.dimension_semantics<arbitrary>], iteration_bounds = array<i64: 1>, scalar_prefetch = 0 : i64, scratch_operands = 0 : i64, tpu.core_type = #tpu.core_type<tc>, window_params = [{pipeline_mode = #tpu.pipeline_mode<synchronous>, transform_indices = @transform_0, window_bounds = array<i64: 8, 256>}, {pipeline_mode = #tpu.pipeline_mode<synchronous>, transform_indices = @transform_1, window_bounds = array<i64: 256, 128>}, {pipeline_mode = #tpu.pipeline_mode<synchronous>, transform_indices = @transform_2, window_bounds = array<i64: 1, 128>}, {pipeline_mode = #tpu.pipeline_mode<synchronous>, transform_indices = @transform_3, window_bounds = array<i64: 8, 128>}]} {
    %c0 = arith.constant 0 : index
    %c0_0 = arith.constant 0 : index
    %0 = vector.load %arg1[%c0, %c0_0] : memref<8x256xbf16, #tpu.memory_space<vmem>>, vector<8x256xbf16>
    %c0_1 = arith.constant 0 : index
    %c0_2 = arith.constant 0 : index
    %1 = vector.load %arg2[%c0_1, %c0_2] : memref<256x128xbf16, #tpu.memory_space<vmem>>, vector<256x128xbf16>
    %cst = arith.constant dense<0.000000e+00> : vector<8x128xf32>
    %2 = tpu.matmul %0, %1, %cst {dimension_numbers = #tpu.dot_dimension_numbers<[1], [0], [0], [1], [0, 0, 1, 1], [], []>} : vector<8x256xbf16>, vector<256x128xbf16>, vector<8x128xf32> -> vector<8x128xf32>
    %c0_3 = arith.constant 0 : index
    %c0_4 = arith.constant 0 : index
    %3 = vector.load %arg3[%c0_3, %c0_4] : memref<1x128xf32, #tpu.memory_space<vmem>>, vector<1x128xf32>
    %4 = vector.broadcast %3 : vector<1x128xf32> to vector<8x128xf32>
    %5 = arith.addf %2, %4 : vector<8x128xf32>
    %6 = math.tanh %5 : vector<8x128xf32>
    %c0_5 = arith.constant 0 : index
    %c0_6 = arith.constant 0 : index
    %7 = vector.load %arg4[%c0_5, %c0_6] : memref<8x128xf32, #tpu.memory_space<vmem>>, vector<8x128xf32>
    tpu.vector_store %arg4[%c0_5, %c0_6], %6 {strides = array<i32>} : memref<8x128xf32, #tpu.memory_space<vmem>>, vector<8x128xf32>,
    return
  }
  func.func @transform_0(%arg0: i32) -> (i32, i32) {
    %c0_i32 = arith.constant 0 : i32
    %c0_i32_0 = arith.constant 0 : i32
    %c0_i32_1 = arith.constant 0 : i32
    return %c0_i32, %c0_i32_0 : i32, i32
  }
  func.func @transform_1(%arg0: i32) -> (i32, i32) {
    %c0_i32 = arith.constant 0 : i32
    %c0_i32_0 = arith.constant 0 : i32
    %c0_i32_1 = arith.constant 0 : i32
    return %c0_i32, %c0_i32_0 : i32, i32
  }
  func.func @transform_2(%arg0: i32) -> (i32, i32) {
    %c0_i32 = arith.constant 0 : i32
    %c0_i32_0 = arith.constant 0 : i32
    %c0_i32_1 = arith.constant 0 : i32
    return %c0_i32, %c0_i32_0 : i32, i32
  }
  func.func @transform_3(%arg0: i32) -> (i32, i32) {
    %c0_i32 = arith.constant 0 : i32
    %c0_i32_0 = arith.constant 0 : i32
    %c0_i32_1 = arith.constant 0 : i32
    return %c0_i32, %c0_i32_0 : i32, i32
  }
}

module attributes {stable_mosaic.version = 11 : i64} {
  func.func @bigru_kernel(%arg0: i32, %arg1: i32, %arg2: memref<8x8x128xbf16, #tpu.memory_space<vmem>>, %arg3: memref<1x128x384xbf16, #tpu.memory_space<vmem>>, %arg4: memref<1x128x384xbf16, #tpu.memory_space<vmem>>, %arg5: memref<1x1x384xf32, #tpu.memory_space<vmem>>, %arg6: memref<1x1x128xf32, #tpu.memory_space<vmem>>, %arg7: memref<8x8x128xf32, #tpu.memory_space<vmem>>, %arg8: memref<1x8x128xf32, #tpu.memory_space<vmem>>, %arg9: memref<8x128xf32, #tpu.memory_space<vmem>>, %arg10: memref<64x384xf32, #tpu.memory_space<vmem>>) attributes {dimension_semantics = [#tpu.dimension_semantics<parallel>, #tpu.dimension_semantics<arbitrary>], iteration_bounds = array<i64: 2, 1>, scalar_prefetch = 0 : i64, scratch_operands = 2 : i64, tpu.core_type = #tpu.core_type<tc>, window_params = [{transform_indices = @transform_0, window_bounds = array<i64: 8, 8, 128>}, {transform_indices = @transform_1, window_bounds = array<i64: 1, 128, 384>}, {transform_indices = @transform_2, window_bounds = array<i64: 1, 128, 384>}, {transform_indices = @transform_3, window_bounds = array<i64: 1, 1, 384>}, {transform_indices = @transform_4, window_bounds = array<i64: 1, 1, 128>}, {transform_indices = @transform_5, window_bounds = array<i64: 8, 8, 128>}, {transform_indices = @transform_6, window_bounds = array<i64: 1, 8, 128>}]} {
    %c0_i32 = arith.constant 0 : i32
    %0 = arith.cmpi eq, %arg1, %c0_i32 : i32
    %1 = arith.extui %0 : i1 to i32
    %c0_i32_0 = arith.constant 0 : i32
    %2 = arith.cmpi ne, %1, %c0_i32_0 : i32
    scf.if %2 {
      %cst_132 = arith.constant 0.000000e+00 : f32
      %372 = vector.broadcast %cst_132 : f32 to vector<8x128xf32>
      %c0_133 = arith.constant 0 : index
      %c0_134 = arith.constant 0 : index
      %373 = vector.load %arg9[%c0_133, %c0_134] : memref<8x128xf32, #tpu.memory_space<vmem>>, vector<8x128xf32>
      tpu.vector_store %arg9[%c0_133, %c0_134], %372 {strides = array<i32>} : memref<8x128xf32, #tpu.memory_space<vmem>>, vector<8x128xf32>,
    } else {
    }
    %c0 = arith.constant 0 : index
    %c0_1 = arith.constant 0 : index
    %c0_2 = arith.constant 0 : index
    %3 = vector.load %arg2[%c0, %c0_1, %c0_2] : memref<8x8x128xbf16, #tpu.memory_space<vmem>>, vector<8x8x128xbf16>
    %4 = vector.shape_cast %3 : vector<8x8x128xbf16> to vector<64x128xbf16>
    %c0_3 = arith.constant 0 : index
    %c0_4 = arith.constant 0 : index
    %c0_5 = arith.constant 0 : index
    %5 = vector.load %arg3[%c0_3, %c0_4, %c0_5] : memref<1x128x384xbf16, #tpu.memory_space<vmem>>, vector<1x128x384xbf16>
    %6 = vector.shape_cast %5 : vector<1x128x384xbf16> to vector<128x384xbf16>
    %cst = arith.constant dense<0.000000e+00> : vector<64x384xf32>
    %7 = tpu.matmul %4, %6, %cst {dimension_numbers = #tpu.dot_dimension_numbers<[1], [0], [0], [1], [0, 0, 1, 1], [], []>} : vector<64x128xbf16>, vector<128x384xbf16>, vector<64x384xf32> -> vector<64x384xf32>
    %c0_6 = arith.constant 0 : index
    %c0_7 = arith.constant 0 : index
    %c0_8 = arith.constant 0 : index
    %8 = vector.load %arg5[%c0_6, %c0_7, %c0_8] : memref<1x1x384xf32, #tpu.memory_space<vmem>>, vector<1x1x384xf32>
    %9 = vector.shape_cast %8 : vector<1x1x384xf32> to vector<1x384xf32>
    %10 = vector.broadcast %9 : vector<1x384xf32> to vector<64x384xf32>
    %11 = arith.addf %7, %10 : vector<64x384xf32>
    %c0_9 = arith.constant 0 : index
    %c0_10 = arith.constant 0 : index
    %12 = vector.load %arg10[%c0_9, %c0_10] : memref<64x384xf32, #tpu.memory_space<vmem>>, vector<64x384xf32>
    tpu.vector_store %arg10[%c0_9, %c0_10], %11 {strides = array<i32>} : memref<64x384xf32, #tpu.memory_space<vmem>>, vector<64x384xf32>,
    %c0_11 = arith.constant 0 : index
    %c0_12 = arith.constant 0 : index
    %c0_13 = arith.constant 0 : index
    %13 = vector.load %arg4[%c0_11, %c0_12, %c0_13] : memref<1x128x384xbf16, #tpu.memory_space<vmem>>, vector<1x128x384xbf16>
    %14 = vector.shape_cast %13 : vector<1x128x384xbf16> to vector<128x384xbf16>
    %c0_14 = arith.constant 0 : index
    %c0_15 = arith.constant 0 : index
    %c0_16 = arith.constant 0 : index
    %15 = vector.load %arg6[%c0_14, %c0_15, %c0_16] : memref<1x1x128xf32, #tpu.memory_space<vmem>>, vector<1x1x128xf32>
    %16 = vector.shape_cast %15 : vector<1x1x128xf32> to vector<1x128xf32>
    %c0_i32_17 = arith.constant 0 : i32
    %c2_i32 = arith.constant 2 : i32
    %17 = arith.muli %c2_i32, %c0_i32_17 : i32
    %c7_i32 = arith.constant 7 : i32
    %18 = arith.subi %c7_i32, %17 : i32
    %19 = arith.muli %arg0, %18 : i32
    %20 = arith.addi %c0_i32_17, %19 : i32
    %c0_18 = arith.constant 0 : index
    %c0_19 = arith.constant 0 : index
    %21 = vector.load %arg9[%c0_18, %c0_19] : memref<8x128xf32, #tpu.memory_space<vmem>>, vector<8x128xf32>
    %22 = arith.truncf %21 : vector<8x128xf32> to vector<8x128xbf16>
    %cst_20 = arith.constant dense<0.000000e+00> : vector<8x384xf32>
    %23 = tpu.matmul %22, %14, %cst_20 {dimension_numbers = #tpu.dot_dimension_numbers<[1], [0], [0], [1], [0, 0, 1, 1], [], []>} : vector<8x128xbf16>, vector<128x384xbf16>, vector<8x384xf32> -> vector<8x384xf32>
    %c8_i32 = arith.constant 8 : i32
    %24 = arith.muli %20, %c8_i32 : i32
    %25 = tpu.assume_multiple %24, 8 : i32
    %26 = arith.index_cast %25 : i32 to index
    %c0_21 = arith.constant 0 : index
    %27 = vector.load %arg10[%26, %c0_21] : memref<64x384xf32, #tpu.memory_space<vmem>>, vector<8x384xf32>
    %28 = vector.extract_strided_slice %27 {offsets = [0, 0], sizes = [8, 128], strides = [1, 1]} : vector<8x384xf32> to vector<8x128xf32>
    %29 = vector.extract_strided_slice %23 {offsets = [0, 0], sizes = [8, 128], strides = [1, 1]} : vector<8x384xf32> to vector<8x128xf32>
    %30 = arith.addf %28, %29 : vector<8x128xf32>
    %31 = arith.negf %30 : vector<8x128xf32>
    %32 = math.exp %31 : vector<8x128xf32>
    %cst_22 = arith.constant 1.000000e+00 : f32
    %33 = vector.broadcast %cst_22 : f32 to vector<8x128xf32>
    %34 = arith.addf %33, %32 : vector<8x128xf32>
    %35 = arith.divf %33, %34 : vector<8x128xf32>
    %36 = vector.extract_strided_slice %27 {offsets = [0, 128], sizes = [8, 128], strides = [1, 1]} : vector<8x384xf32> to vector<8x128xf32>
    %37 = vector.extract_strided_slice %23 {offsets = [0, 128], sizes = [8, 128], strides = [1, 1]} : vector<8x384xf32> to vector<8x128xf32>
    %38 = arith.addf %36, %37 : vector<8x128xf32>
    %39 = arith.negf %38 : vector<8x128xf32>
    %40 = math.exp %39 : vector<8x128xf32>
    %cst_23 = arith.constant 1.000000e+00 : f32
    %41 = vector.broadcast %cst_23 : f32 to vector<8x128xf32>
    %42 = arith.addf %41, %40 : vector<8x128xf32>
    %43 = arith.divf %41, %42 : vector<8x128xf32>
    %44 = vector.extract_strided_slice %27 {offsets = [0, 256], sizes = [8, 128], strides = [1, 1]} : vector<8x384xf32> to vector<8x128xf32>
    %45 = vector.extract_strided_slice %23 {offsets = [0, 256], sizes = [8, 128], strides = [1, 1]} : vector<8x384xf32> to vector<8x128xf32>
    %46 = vector.broadcast %16 : vector<1x128xf32> to vector<8x128xf32>
    %47 = arith.addf %45, %46 : vector<8x128xf32>
    %48 = arith.mulf %35, %47 : vector<8x128xf32>
    %49 = arith.addf %44, %48 : vector<8x128xf32>
    %50 = math.tanh %49 : vector<8x128xf32>
    %cst_24 = arith.constant 1.000000e+00 : f32
    %51 = vector.broadcast %cst_24 : f32 to vector<8x128xf32>
    %52 = arith.subf %51, %43 : vector<8x128xf32>
    %53 = arith.mulf %52, %50 : vector<8x128xf32>
    %54 = arith.mulf %43, %21 : vector<8x128xf32>
    %55 = arith.addf %53, %54 : vector<8x128xf32>
    %c0_25 = arith.constant 0 : index
    %c0_26 = arith.constant 0 : index
    %56 = vector.load %arg9[%c0_25, %c0_26] : memref<8x128xf32, #tpu.memory_space<vmem>>, vector<8x128xf32>
    tpu.vector_store %arg9[%c0_25, %c0_26], %55 {strides = array<i32>} : memref<8x128xf32, #tpu.memory_space<vmem>>, vector<8x128xf32>,
    %57 = arith.index_cast %20 : i32 to index
    %c0_27 = arith.constant 0 : index
    %c0_28 = arith.constant 0 : index
    %58 = vector.load %arg7[%57, %c0_27, %c0_28] : memref<8x8x128xf32, #tpu.memory_space<vmem>>, vector<1x8x128xf32>
    %59 = vector.shape_cast %58 : vector<1x8x128xf32> to vector<8x128xf32>
    %60 = vector.shape_cast %55 : vector<8x128xf32> to vector<1x8x128xf32>
    tpu.vector_store %arg7[%57, %c0_27, %c0_28], %60 {strides = array<i32>} : memref<8x8x128xf32, #tpu.memory_space<vmem>>, vector<1x8x128xf32>,
    %c1_i32 = arith.constant 1 : i32
    %c2_i32_29 = arith.constant 2 : i32
    %61 = arith.muli %c2_i32_29, %c1_i32 : i32
    %c7_i32_30 = arith.constant 7 : i32
    %62 = arith.subi %c7_i32_30, %61 : i32
    %63 = arith.muli %arg0, %62 : i32
    %64 = arith.addi %c1_i32, %63 : i32
    %c0_31 = arith.constant 0 : index
    %c0_32 = arith.constant 0 : index
    %65 = vector.load %arg9[%c0_31, %c0_32] : memref<8x128xf32, #tpu.memory_space<vmem>>, vector<8x128xf32>
    %66 = arith.truncf %65 : vector<8x128xf32> to vector<8x128xbf16>
    %cst_33 = arith.constant dense<0.000000e+00> : vector<8x384xf32>
    %67 = tpu.matmul %66, %14, %cst_33 {dimension_numbers = #tpu.dot_dimension_numbers<[1], [0], [0], [1], [0, 0, 1, 1], [], []>} : vector<8x128xbf16>, vector<128x384xbf16>, vector<8x384xf32> -> vector<8x384xf32>
    %c8_i32_34 = arith.constant 8 : i32
    %68 = arith.muli %64, %c8_i32_34 : i32
    %69 = tpu.assume_multiple %68, 8 : i32
    %70 = arith.index_cast %69 : i32 to index
    %c0_35 = arith.constant 0 : index
    %71 = vector.load %arg10[%70, %c0_35] : memref<64x384xf32, #tpu.memory_space<vmem>>, vector<8x384xf32>
    %72 = vector.extract_strided_slice %71 {offsets = [0, 0], sizes = [8, 128], strides = [1, 1]} : vector<8x384xf32> to vector<8x128xf32>
    %73 = vector.extract_strided_slice %67 {offsets = [0, 0], sizes = [8, 128], strides = [1, 1]} : vector<8x384xf32> to vector<8x128xf32>
    %74 = arith.addf %72, %73 : vector<8x128xf32>
    %75 = arith.negf %74 : vector<8x128xf32>
    %76 = math.exp %75 : vector<8x128xf32>
    %cst_36 = arith.constant 1.000000e+00 : f32
    %77 = vector.broadcast %cst_36 : f32 to vector<8x128xf32>
    %78 = arith.addf %77, %76 : vector<8x128xf32>
    %79 = arith.divf %77, %78 : vector<8x128xf32>
    %80 = vector.extract_strided_slice %71 {offsets = [0, 128], sizes = [8, 128], strides = [1, 1]} : vector<8x384xf32> to vector<8x128xf32>
    %81 = vector.extract_strided_slice %67 {offsets = [0, 128], sizes = [8, 128], strides = [1, 1]} : vector<8x384xf32> to vector<8x128xf32>
    %82 = arith.addf %80, %81 : vector<8x128xf32>
    %83 = arith.negf %82 : vector<8x128xf32>
    %84 = math.exp %83 : vector<8x128xf32>
    %cst_37 = arith.constant 1.000000e+00 : f32
    %85 = vector.broadcast %cst_37 : f32 to vector<8x128xf32>
    %86 = arith.addf %85, %84 : vector<8x128xf32>
    %87 = arith.divf %85, %86 : vector<8x128xf32>
    %88 = vector.extract_strided_slice %71 {offsets = [0, 256], sizes = [8, 128], strides = [1, 1]} : vector<8x384xf32> to vector<8x128xf32>
    %89 = vector.extract_strided_slice %67 {offsets = [0, 256], sizes = [8, 128], strides = [1, 1]} : vector<8x384xf32> to vector<8x128xf32>
    %90 = vector.broadcast %16 : vector<1x128xf32> to vector<8x128xf32>
    %91 = arith.addf %89, %90 : vector<8x128xf32>
    %92 = arith.mulf %79, %91 : vector<8x128xf32>
    %93 = arith.addf %88, %92 : vector<8x128xf32>
    %94 = math.tanh %93 : vector<8x128xf32>
    %cst_38 = arith.constant 1.000000e+00 : f32
    %95 = vector.broadcast %cst_38 : f32 to vector<8x128xf32>
    %96 = arith.subf %95, %87 : vector<8x128xf32>
    %97 = arith.mulf %96, %94 : vector<8x128xf32>
    %98 = arith.mulf %87, %65 : vector<8x128xf32>
    %99 = arith.addf %97, %98 : vector<8x128xf32>
    %c0_39 = arith.constant 0 : index
    %c0_40 = arith.constant 0 : index
    %100 = vector.load %arg9[%c0_39, %c0_40] : memref<8x128xf32, #tpu.memory_space<vmem>>, vector<8x128xf32>
    tpu.vector_store %arg9[%c0_39, %c0_40], %99 {strides = array<i32>} : memref<8x128xf32, #tpu.memory_space<vmem>>, vector<8x128xf32>,
    %101 = arith.index_cast %64 : i32 to index
    %c0_41 = arith.constant 0 : index
    %c0_42 = arith.constant 0 : index
    %102 = vector.load %arg7[%101, %c0_41, %c0_42] : memref<8x8x128xf32, #tpu.memory_space<vmem>>, vector<1x8x128xf32>
    %103 = vector.shape_cast %102 : vector<1x8x128xf32> to vector<8x128xf32>
    %104 = vector.shape_cast %99 : vector<8x128xf32> to vector<1x8x128xf32>
    tpu.vector_store %arg7[%101, %c0_41, %c0_42], %104 {strides = array<i32>} : memref<8x8x128xf32, #tpu.memory_space<vmem>>, vector<1x8x128xf32>,
    %c2_i32_43 = arith.constant 2 : i32
    %c2_i32_44 = arith.constant 2 : i32
    %105 = arith.muli %c2_i32_44, %c2_i32_43 : i32
    %c7_i32_45 = arith.constant 7 : i32
    %106 = arith.subi %c7_i32_45, %105 : i32
    %107 = arith.muli %arg0, %106 : i32
    %108 = arith.addi %c2_i32_43, %107 : i32
    %c0_46 = arith.constant 0 : index
    %c0_47 = arith.constant 0 : index
    %109 = vector.load %arg9[%c0_46, %c0_47] : memref<8x128xf32, #tpu.memory_space<vmem>>, vector<8x128xf32>
    %110 = arith.truncf %109 : vector<8x128xf32> to vector<8x128xbf16>
    %cst_48 = arith.constant dense<0.000000e+00> : vector<8x384xf32>
    %111 = tpu.matmul %110, %14, %cst_48 {dimension_numbers = #tpu.dot_dimension_numbers<[1], [0], [0], [1], [0, 0, 1, 1], [], []>} : vector<8x128xbf16>, vector<128x384xbf16>, vector<8x384xf32> -> vector<8x384xf32>
    %c8_i32_49 = arith.constant 8 : i32
    %112 = arith.muli %108, %c8_i32_49 : i32
    %113 = tpu.assume_multiple %112, 8 : i32
    %114 = arith.index_cast %113 : i32 to index
    %c0_50 = arith.constant 0 : index
    %115 = vector.load %arg10[%114, %c0_50] : memref<64x384xf32, #tpu.memory_space<vmem>>, vector<8x384xf32>
    %116 = vector.extract_strided_slice %115 {offsets = [0, 0], sizes = [8, 128], strides = [1, 1]} : vector<8x384xf32> to vector<8x128xf32>
    %117 = vector.extract_strided_slice %111 {offsets = [0, 0], sizes = [8, 128], strides = [1, 1]} : vector<8x384xf32> to vector<8x128xf32>
    %118 = arith.addf %116, %117 : vector<8x128xf32>
    %119 = arith.negf %118 : vector<8x128xf32>
    %120 = math.exp %119 : vector<8x128xf32>
    %cst_51 = arith.constant 1.000000e+00 : f32
    %121 = vector.broadcast %cst_51 : f32 to vector<8x128xf32>
    %122 = arith.addf %121, %120 : vector<8x128xf32>
    %123 = arith.divf %121, %122 : vector<8x128xf32>
    %124 = vector.extract_strided_slice %115 {offsets = [0, 128], sizes = [8, 128], strides = [1, 1]} : vector<8x384xf32> to vector<8x128xf32>
    %125 = vector.extract_strided_slice %111 {offsets = [0, 128], sizes = [8, 128], strides = [1, 1]} : vector<8x384xf32> to vector<8x128xf32>
    %126 = arith.addf %124, %125 : vector<8x128xf32>
    %127 = arith.negf %126 : vector<8x128xf32>
    %128 = math.exp %127 : vector<8x128xf32>
    %cst_52 = arith.constant 1.000000e+00 : f32
    %129 = vector.broadcast %cst_52 : f32 to vector<8x128xf32>
    %130 = arith.addf %129, %128 : vector<8x128xf32>
    %131 = arith.divf %129, %130 : vector<8x128xf32>
    %132 = vector.extract_strided_slice %115 {offsets = [0, 256], sizes = [8, 128], strides = [1, 1]} : vector<8x384xf32> to vector<8x128xf32>
    %133 = vector.extract_strided_slice %111 {offsets = [0, 256], sizes = [8, 128], strides = [1, 1]} : vector<8x384xf32> to vector<8x128xf32>
    %134 = vector.broadcast %16 : vector<1x128xf32> to vector<8x128xf32>
    %135 = arith.addf %133, %134 : vector<8x128xf32>
    %136 = arith.mulf %123, %135 : vector<8x128xf32>
    %137 = arith.addf %132, %136 : vector<8x128xf32>
    %138 = math.tanh %137 : vector<8x128xf32>
    %cst_53 = arith.constant 1.000000e+00 : f32
    %139 = vector.broadcast %cst_53 : f32 to vector<8x128xf32>
    %140 = arith.subf %139, %131 : vector<8x128xf32>
    %141 = arith.mulf %140, %138 : vector<8x128xf32>
    %142 = arith.mulf %131, %109 : vector<8x128xf32>
    %143 = arith.addf %141, %142 : vector<8x128xf32>
    %c0_54 = arith.constant 0 : index
    %c0_55 = arith.constant 0 : index
    %144 = vector.load %arg9[%c0_54, %c0_55] : memref<8x128xf32, #tpu.memory_space<vmem>>, vector<8x128xf32>
    tpu.vector_store %arg9[%c0_54, %c0_55], %143 {strides = array<i32>} : memref<8x128xf32, #tpu.memory_space<vmem>>, vector<8x128xf32>,
    %145 = arith.index_cast %108 : i32 to index
    %c0_56 = arith.constant 0 : index
    %c0_57 = arith.constant 0 : index
    %146 = vector.load %arg7[%145, %c0_56, %c0_57] : memref<8x8x128xf32, #tpu.memory_space<vmem>>, vector<1x8x128xf32>
    %147 = vector.shape_cast %146 : vector<1x8x128xf32> to vector<8x128xf32>
    %148 = vector.shape_cast %143 : vector<8x128xf32> to vector<1x8x128xf32>
    tpu.vector_store %arg7[%145, %c0_56, %c0_57], %148 {strides = array<i32>} : memref<8x8x128xf32, #tpu.memory_space<vmem>>, vector<1x8x128xf32>,
    %c3_i32 = arith.constant 3 : i32
    %c2_i32_58 = arith.constant 2 : i32
    %149 = arith.muli %c2_i32_58, %c3_i32 : i32
    %c7_i32_59 = arith.constant 7 : i32
    %150 = arith.subi %c7_i32_59, %149 : i32
    %151 = arith.muli %arg0, %150 : i32
    %152 = arith.addi %c3_i32, %151 : i32
    %c0_60 = arith.constant 0 : index
    %c0_61 = arith.constant 0 : index
    %153 = vector.load %arg9[%c0_60, %c0_61] : memref<8x128xf32, #tpu.memory_space<vmem>>, vector<8x128xf32>
    %154 = arith.truncf %153 : vector<8x128xf32> to vector<8x128xbf16>
    %cst_62 = arith.constant dense<0.000000e+00> : vector<8x384xf32>
    %155 = tpu.matmul %154, %14, %cst_62 {dimension_numbers = #tpu.dot_dimension_numbers<[1], [0], [0], [1], [0, 0, 1, 1], [], []>} : vector<8x128xbf16>, vector<128x384xbf16>, vector<8x384xf32> -> vector<8x384xf32>
    %c8_i32_63 = arith.constant 8 : i32
    %156 = arith.muli %152, %c8_i32_63 : i32
    %157 = tpu.assume_multiple %156, 8 : i32
    %158 = arith.index_cast %157 : i32 to index
    %c0_64 = arith.constant 0 : index
    %159 = vector.load %arg10[%158, %c0_64] : memref<64x384xf32, #tpu.memory_space<vmem>>, vector<8x384xf32>
    %160 = vector.extract_strided_slice %159 {offsets = [0, 0], sizes = [8, 128], strides = [1, 1]} : vector<8x384xf32> to vector<8x128xf32>
    %161 = vector.extract_strided_slice %155 {offsets = [0, 0], sizes = [8, 128], strides = [1, 1]} : vector<8x384xf32> to vector<8x128xf32>
    %162 = arith.addf %160, %161 : vector<8x128xf32>
    %163 = arith.negf %162 : vector<8x128xf32>
    %164 = math.exp %163 : vector<8x128xf32>
    %cst_65 = arith.constant 1.000000e+00 : f32
    %165 = vector.broadcast %cst_65 : f32 to vector<8x128xf32>
    %166 = arith.addf %165, %164 : vector<8x128xf32>
    %167 = arith.divf %165, %166 : vector<8x128xf32>
    %168 = vector.extract_strided_slice %159 {offsets = [0, 128], sizes = [8, 128], strides = [1, 1]} : vector<8x384xf32> to vector<8x128xf32>
    %169 = vector.extract_strided_slice %155 {offsets = [0, 128], sizes = [8, 128], strides = [1, 1]} : vector<8x384xf32> to vector<8x128xf32>
    %170 = arith.addf %168, %169 : vector<8x128xf32>
    %171 = arith.negf %170 : vector<8x128xf32>
    %172 = math.exp %171 : vector<8x128xf32>
    %cst_66 = arith.constant 1.000000e+00 : f32
    %173 = vector.broadcast %cst_66 : f32 to vector<8x128xf32>
    %174 = arith.addf %173, %172 : vector<8x128xf32>
    %175 = arith.divf %173, %174 : vector<8x128xf32>
    %176 = vector.extract_strided_slice %159 {offsets = [0, 256], sizes = [8, 128], strides = [1, 1]} : vector<8x384xf32> to vector<8x128xf32>
    %177 = vector.extract_strided_slice %155 {offsets = [0, 256], sizes = [8, 128], strides = [1, 1]} : vector<8x384xf32> to vector<8x128xf32>
    %178 = vector.broadcast %16 : vector<1x128xf32> to vector<8x128xf32>
    %179 = arith.addf %177, %178 : vector<8x128xf32>
    %180 = arith.mulf %167, %179 : vector<8x128xf32>
    %181 = arith.addf %176, %180 : vector<8x128xf32>
    %182 = math.tanh %181 : vector<8x128xf32>
    %cst_67 = arith.constant 1.000000e+00 : f32
    %183 = vector.broadcast %cst_67 : f32 to vector<8x128xf32>
    %184 = arith.subf %183, %175 : vector<8x128xf32>
    %185 = arith.mulf %184, %182 : vector<8x128xf32>
    %186 = arith.mulf %175, %153 : vector<8x128xf32>
    %187 = arith.addf %185, %186 : vector<8x128xf32>
    %c0_68 = arith.constant 0 : index
    %c0_69 = arith.constant 0 : index
    %188 = vector.load %arg9[%c0_68, %c0_69] : memref<8x128xf32, #tpu.memory_space<vmem>>, vector<8x128xf32>
    tpu.vector_store %arg9[%c0_68, %c0_69], %187 {strides = array<i32>} : memref<8x128xf32, #tpu.memory_space<vmem>>, vector<8x128xf32>,
    %189 = arith.index_cast %152 : i32 to index
    %c0_70 = arith.constant 0 : index
    %c0_71 = arith.constant 0 : index
    %190 = vector.load %arg7[%189, %c0_70, %c0_71] : memref<8x8x128xf32, #tpu.memory_space<vmem>>, vector<1x8x128xf32>
    %191 = vector.shape_cast %190 : vector<1x8x128xf32> to vector<8x128xf32>
    %192 = vector.shape_cast %187 : vector<8x128xf32> to vector<1x8x128xf32>
    tpu.vector_store %arg7[%189, %c0_70, %c0_71], %192 {strides = array<i32>} : memref<8x8x128xf32, #tpu.memory_space<vmem>>, vector<1x8x128xf32>,
    %c4_i32 = arith.constant 4 : i32
    %c2_i32_72 = arith.constant 2 : i32
    %193 = arith.muli %c2_i32_72, %c4_i32 : i32
    %c7_i32_73 = arith.constant 7 : i32
    %194 = arith.subi %c7_i32_73, %193 : i32
    %195 = arith.muli %arg0, %194 : i32
    %196 = arith.addi %c4_i32, %195 : i32
    %c0_74 = arith.constant 0 : index
    %c0_75 = arith.constant 0 : index
    %197 = vector.load %arg9[%c0_74, %c0_75] : memref<8x128xf32, #tpu.memory_space<vmem>>, vector<8x128xf32>
    %198 = arith.truncf %197 : vector<8x128xf32> to vector<8x128xbf16>
    %cst_76 = arith.constant dense<0.000000e+00> : vector<8x384xf32>
    %199 = tpu.matmul %198, %14, %cst_76 {dimension_numbers = #tpu.dot_dimension_numbers<[1], [0], [0], [1], [0, 0, 1, 1], [], []>} : vector<8x128xbf16>, vector<128x384xbf16>, vector<8x384xf32> -> vector<8x384xf32>
    %c8_i32_77 = arith.constant 8 : i32
    %200 = arith.muli %196, %c8_i32_77 : i32
    %201 = tpu.assume_multiple %200, 8 : i32
    %202 = arith.index_cast %201 : i32 to index
    %c0_78 = arith.constant 0 : index
    %203 = vector.load %arg10[%202, %c0_78] : memref<64x384xf32, #tpu.memory_space<vmem>>, vector<8x384xf32>
    %204 = vector.extract_strided_slice %203 {offsets = [0, 0], sizes = [8, 128], strides = [1, 1]} : vector<8x384xf32> to vector<8x128xf32>
    %205 = vector.extract_strided_slice %199 {offsets = [0, 0], sizes = [8, 128], strides = [1, 1]} : vector<8x384xf32> to vector<8x128xf32>
    %206 = arith.addf %204, %205 : vector<8x128xf32>
    %207 = arith.negf %206 : vector<8x128xf32>
    %208 = math.exp %207 : vector<8x128xf32>
    %cst_79 = arith.constant 1.000000e+00 : f32
    %209 = vector.broadcast %cst_79 : f32 to vector<8x128xf32>
    %210 = arith.addf %209, %208 : vector<8x128xf32>
    %211 = arith.divf %209, %210 : vector<8x128xf32>
    %212 = vector.extract_strided_slice %203 {offsets = [0, 128], sizes = [8, 128], strides = [1, 1]} : vector<8x384xf32> to vector<8x128xf32>
    %213 = vector.extract_strided_slice %199 {offsets = [0, 128], sizes = [8, 128], strides = [1, 1]} : vector<8x384xf32> to vector<8x128xf32>
    %214 = arith.addf %212, %213 : vector<8x128xf32>
    %215 = arith.negf %214 : vector<8x128xf32>
    %216 = math.exp %215 : vector<8x128xf32>
    %cst_80 = arith.constant 1.000000e+00 : f32
    %217 = vector.broadcast %cst_80 : f32 to vector<8x128xf32>
    %218 = arith.addf %217, %216 : vector<8x128xf32>
    %219 = arith.divf %217, %218 : vector<8x128xf32>
    %220 = vector.extract_strided_slice %203 {offsets = [0, 256], sizes = [8, 128], strides = [1, 1]} : vector<8x384xf32> to vector<8x128xf32>
    %221 = vector.extract_strided_slice %199 {offsets = [0, 256], sizes = [8, 128], strides = [1, 1]} : vector<8x384xf32> to vector<8x128xf32>
    %222 = vector.broadcast %16 : vector<1x128xf32> to vector<8x128xf32>
    %223 = arith.addf %221, %222 : vector<8x128xf32>
    %224 = arith.mulf %211, %223 : vector<8x128xf32>
    %225 = arith.addf %220, %224 : vector<8x128xf32>
    %226 = math.tanh %225 : vector<8x128xf32>
    %cst_81 = arith.constant 1.000000e+00 : f32
    %227 = vector.broadcast %cst_81 : f32 to vector<8x128xf32>
    %228 = arith.subf %227, %219 : vector<8x128xf32>
    %229 = arith.mulf %228, %226 : vector<8x128xf32>
    %230 = arith.mulf %219, %197 : vector<8x128xf32>
    %231 = arith.addf %229, %230 : vector<8x128xf32>
    %c0_82 = arith.constant 0 : index
    %c0_83 = arith.constant 0 : index
    %232 = vector.load %arg9[%c0_82, %c0_83] : memref<8x128xf32, #tpu.memory_space<vmem>>, vector<8x128xf32>
    tpu.vector_store %arg9[%c0_82, %c0_83], %231 {strides = array<i32>} : memref<8x128xf32, #tpu.memory_space<vmem>>, vector<8x128xf32>,
    %233 = arith.index_cast %196 : i32 to index
    %c0_84 = arith.constant 0 : index
    %c0_85 = arith.constant 0 : index
    %234 = vector.load %arg7[%233, %c0_84, %c0_85] : memref<8x8x128xf32, #tpu.memory_space<vmem>>, vector<1x8x128xf32>
    %235 = vector.shape_cast %234 : vector<1x8x128xf32> to vector<8x128xf32>
    %236 = vector.shape_cast %231 : vector<8x128xf32> to vector<1x8x128xf32>
    tpu.vector_store %arg7[%233, %c0_84, %c0_85], %236 {strides = array<i32>} : memref<8x8x128xf32, #tpu.memory_space<vmem>>, vector<1x8x128xf32>,
    %c5_i32 = arith.constant 5 : i32
    %c2_i32_86 = arith.constant 2 : i32
    %237 = arith.muli %c2_i32_86, %c5_i32 : i32
    %c7_i32_87 = arith.constant 7 : i32
    %238 = arith.subi %c7_i32_87, %237 : i32
    %239 = arith.muli %arg0, %238 : i32
    %240 = arith.addi %c5_i32, %239 : i32
    %c0_88 = arith.constant 0 : index
    %c0_89 = arith.constant 0 : index
    %241 = vector.load %arg9[%c0_88, %c0_89] : memref<8x128xf32, #tpu.memory_space<vmem>>, vector<8x128xf32>
    %242 = arith.truncf %241 : vector<8x128xf32> to vector<8x128xbf16>
    %cst_90 = arith.constant dense<0.000000e+00> : vector<8x384xf32>
    %243 = tpu.matmul %242, %14, %cst_90 {dimension_numbers = #tpu.dot_dimension_numbers<[1], [0], [0], [1], [0, 0, 1, 1], [], []>} : vector<8x128xbf16>, vector<128x384xbf16>, vector<8x384xf32> -> vector<8x384xf32>
    %c8_i32_91 = arith.constant 8 : i32
    %244 = arith.muli %240, %c8_i32_91 : i32
    %245 = tpu.assume_multiple %244, 8 : i32
    %246 = arith.index_cast %245 : i32 to index
    %c0_92 = arith.constant 0 : index
    %247 = vector.load %arg10[%246, %c0_92] : memref<64x384xf32, #tpu.memory_space<vmem>>, vector<8x384xf32>
    %248 = vector.extract_strided_slice %247 {offsets = [0, 0], sizes = [8, 128], strides = [1, 1]} : vector<8x384xf32> to vector<8x128xf32>
    %249 = vector.extract_strided_slice %243 {offsets = [0, 0], sizes = [8, 128], strides = [1, 1]} : vector<8x384xf32> to vector<8x128xf32>
    %250 = arith.addf %248, %249 : vector<8x128xf32>
    %251 = arith.negf %250 : vector<8x128xf32>
    %252 = math.exp %251 : vector<8x128xf32>
    %cst_93 = arith.constant 1.000000e+00 : f32
    %253 = vector.broadcast %cst_93 : f32 to vector<8x128xf32>
    %254 = arith.addf %253, %252 : vector<8x128xf32>
    %255 = arith.divf %253, %254 : vector<8x128xf32>
    %256 = vector.extract_strided_slice %247 {offsets = [0, 128], sizes = [8, 128], strides = [1, 1]} : vector<8x384xf32> to vector<8x128xf32>
    %257 = vector.extract_strided_slice %243 {offsets = [0, 128], sizes = [8, 128], strides = [1, 1]} : vector<8x384xf32> to vector<8x128xf32>
    %258 = arith.addf %256, %257 : vector<8x128xf32>
    %259 = arith.negf %258 : vector<8x128xf32>
    %260 = math.exp %259 : vector<8x128xf32>
    %cst_94 = arith.constant 1.000000e+00 : f32
    %261 = vector.broadcast %cst_94 : f32 to vector<8x128xf32>
    %262 = arith.addf %261, %260 : vector<8x128xf32>
    %263 = arith.divf %261, %262 : vector<8x128xf32>
    %264 = vector.extract_strided_slice %247 {offsets = [0, 256], sizes = [8, 128], strides = [1, 1]} : vector<8x384xf32> to vector<8x128xf32>
    %265 = vector.extract_strided_slice %243 {offsets = [0, 256], sizes = [8, 128], strides = [1, 1]} : vector<8x384xf32> to vector<8x128xf32>
    %266 = vector.broadcast %16 : vector<1x128xf32> to vector<8x128xf32>
    %267 = arith.addf %265, %266 : vector<8x128xf32>
    %268 = arith.mulf %255, %267 : vector<8x128xf32>
    %269 = arith.addf %264, %268 : vector<8x128xf32>
    %270 = math.tanh %269 : vector<8x128xf32>
    %cst_95 = arith.constant 1.000000e+00 : f32
    %271 = vector.broadcast %cst_95 : f32 to vector<8x128xf32>
    %272 = arith.subf %271, %263 : vector<8x128xf32>
    %273 = arith.mulf %272, %270 : vector<8x128xf32>
    %274 = arith.mulf %263, %241 : vector<8x128xf32>
    %275 = arith.addf %273, %274 : vector<8x128xf32>
    %c0_96 = arith.constant 0 : index
    %c0_97 = arith.constant 0 : index
    %276 = vector.load %arg9[%c0_96, %c0_97] : memref<8x128xf32, #tpu.memory_space<vmem>>, vector<8x128xf32>
    tpu.vector_store %arg9[%c0_96, %c0_97], %275 {strides = array<i32>} : memref<8x128xf32, #tpu.memory_space<vmem>>, vector<8x128xf32>,
    %277 = arith.index_cast %240 : i32 to index
    %c0_98 = arith.constant 0 : index
    %c0_99 = arith.constant 0 : index
    %278 = vector.load %arg7[%277, %c0_98, %c0_99] : memref<8x8x128xf32, #tpu.memory_space<vmem>>, vector<1x8x128xf32>
    %279 = vector.shape_cast %278 : vector<1x8x128xf32> to vector<8x128xf32>
    %280 = vector.shape_cast %275 : vector<8x128xf32> to vector<1x8x128xf32>
    tpu.vector_store %arg7[%277, %c0_98, %c0_99], %280 {strides = array<i32>} : memref<8x8x128xf32, #tpu.memory_space<vmem>>, vector<1x8x128xf32>,
    %c6_i32 = arith.constant 6 : i32
    %c2_i32_100 = arith.constant 2 : i32
    %281 = arith.muli %c2_i32_100, %c6_i32 : i32
    %c7_i32_101 = arith.constant 7 : i32
    %282 = arith.subi %c7_i32_101, %281 : i32
    %283 = arith.muli %arg0, %282 : i32
    %284 = arith.addi %c6_i32, %283 : i32
    %c0_102 = arith.constant 0 : index
    %c0_103 = arith.constant 0 : index
    %285 = vector.load %arg9[%c0_102, %c0_103] : memref<8x128xf32, #tpu.memory_space<vmem>>, vector<8x128xf32>
    %286 = arith.truncf %285 : vector<8x128xf32> to vector<8x128xbf16>
    %cst_104 = arith.constant dense<0.000000e+00> : vector<8x384xf32>
    %287 = tpu.matmul %286, %14, %cst_104 {dimension_numbers = #tpu.dot_dimension_numbers<[1], [0], [0], [1], [0, 0, 1, 1], [], []>} : vector<8x128xbf16>, vector<128x384xbf16>, vector<8x384xf32> -> vector<8x384xf32>
    %c8_i32_105 = arith.constant 8 : i32
    %288 = arith.muli %284, %c8_i32_105 : i32
    %289 = tpu.assume_multiple %288, 8 : i32
    %290 = arith.index_cast %289 : i32 to index
    %c0_106 = arith.constant 0 : index
    %291 = vector.load %arg10[%290, %c0_106] : memref<64x384xf32, #tpu.memory_space<vmem>>, vector<8x384xf32>
    %292 = vector.extract_strided_slice %291 {offsets = [0, 0], sizes = [8, 128], strides = [1, 1]} : vector<8x384xf32> to vector<8x128xf32>
    %293 = vector.extract_strided_slice %287 {offsets = [0, 0], sizes = [8, 128], strides = [1, 1]} : vector<8x384xf32> to vector<8x128xf32>
    %294 = arith.addf %292, %293 : vector<8x128xf32>
    %295 = arith.negf %294 : vector<8x128xf32>
    %296 = math.exp %295 : vector<8x128xf32>
    %cst_107 = arith.constant 1.000000e+00 : f32
    %297 = vector.broadcast %cst_107 : f32 to vector<8x128xf32>
    %298 = arith.addf %297, %296 : vector<8x128xf32>
    %299 = arith.divf %297, %298 : vector<8x128xf32>
    %300 = vector.extract_strided_slice %291 {offsets = [0, 128], sizes = [8, 128], strides = [1, 1]} : vector<8x384xf32> to vector<8x128xf32>
    %301 = vector.extract_strided_slice %287 {offsets = [0, 128], sizes = [8, 128], strides = [1, 1]} : vector<8x384xf32> to vector<8x128xf32>
    %302 = arith.addf %300, %301 : vector<8x128xf32>
    %303 = arith.negf %302 : vector<8x128xf32>
    %304 = math.exp %303 : vector<8x128xf32>
    %cst_108 = arith.constant 1.000000e+00 : f32
    %305 = vector.broadcast %cst_108 : f32 to vector<8x128xf32>
    %306 = arith.addf %305, %304 : vector<8x128xf32>
    %307 = arith.divf %305, %306 : vector<8x128xf32>
    %308 = vector.extract_strided_slice %291 {offsets = [0, 256], sizes = [8, 128], strides = [1, 1]} : vector<8x384xf32> to vector<8x128xf32>
    %309 = vector.extract_strided_slice %287 {offsets = [0, 256], sizes = [8, 128], strides = [1, 1]} : vector<8x384xf32> to vector<8x128xf32>
    %310 = vector.broadcast %16 : vector<1x128xf32> to vector<8x128xf32>
    %311 = arith.addf %309, %310 : vector<8x128xf32>
    %312 = arith.mulf %299, %311 : vector<8x128xf32>
    %313 = arith.addf %308, %312 : vector<8x128xf32>
    %314 = math.tanh %313 : vector<8x128xf32>
    %cst_109 = arith.constant 1.000000e+00 : f32
    %315 = vector.broadcast %cst_109 : f32 to vector<8x128xf32>
    %316 = arith.subf %315, %307 : vector<8x128xf32>
    %317 = arith.mulf %316, %314 : vector<8x128xf32>
    %318 = arith.mulf %307, %285 : vector<8x128xf32>
    %319 = arith.addf %317, %318 : vector<8x128xf32>
    %c0_110 = arith.constant 0 : index
    %c0_111 = arith.constant 0 : index
    %320 = vector.load %arg9[%c0_110, %c0_111] : memref<8x128xf32, #tpu.memory_space<vmem>>, vector<8x128xf32>
    tpu.vector_store %arg9[%c0_110, %c0_111], %319 {strides = array<i32>} : memref<8x128xf32, #tpu.memory_space<vmem>>, vector<8x128xf32>,
    %321 = arith.index_cast %284 : i32 to index
    %c0_112 = arith.constant 0 : index
    %c0_113 = arith.constant 0 : index
    %322 = vector.load %arg7[%321, %c0_112, %c0_113] : memref<8x8x128xf32, #tpu.memory_space<vmem>>, vector<1x8x128xf32>
    %323 = vector.shape_cast %322 : vector<1x8x128xf32> to vector<8x128xf32>
    %324 = vector.shape_cast %319 : vector<8x128xf32> to vector<1x8x128xf32>
    tpu.vector_store %arg7[%321, %c0_112, %c0_113], %324 {strides = array<i32>} : memref<8x8x128xf32, #tpu.memory_space<vmem>>, vector<1x8x128xf32>,
    %c7_i32_114 = arith.constant 7 : i32
    %c2_i32_115 = arith.constant 2 : i32
    %325 = arith.muli %c2_i32_115, %c7_i32_114 : i32
    %c7_i32_116 = arith.constant 7 : i32
    %326 = arith.subi %c7_i32_116, %325 : i32
    %327 = arith.muli %arg0, %326 : i32
    %328 = arith.addi %c7_i32_114, %327 : i32
    %c0_117 = arith.constant 0 : index
    %c0_118 = arith.constant 0 : index
    %329 = vector.load %arg9[%c0_117, %c0_118] : memref<8x128xf32, #tpu.memory_space<vmem>>, vector<8x128xf32>
    %330 = arith.truncf %329 : vector<8x128xf32> to vector<8x128xbf16>
    %cst_119 = arith.constant dense<0.000000e+00> : vector<8x384xf32>
    %331 = tpu.matmul %330, %14, %cst_119 {dimension_numbers = #tpu.dot_dimension_numbers<[1], [0], [0], [1], [0, 0, 1, 1], [], []>} : vector<8x128xbf16>, vector<128x384xbf16>, vector<8x384xf32> -> vector<8x384xf32>
    %c8_i32_120 = arith.constant 8 : i32
    %332 = arith.muli %328, %c8_i32_120 : i32
    %333 = tpu.assume_multiple %332, 8 : i32
    %334 = arith.index_cast %333 : i32 to index
    %c0_121 = arith.constant 0 : index
    %335 = vector.load %arg10[%334, %c0_121] : memref<64x384xf32, #tpu.memory_space<vmem>>, vector<8x384xf32>
    %336 = vector.extract_strided_slice %335 {offsets = [0, 0], sizes = [8, 128], strides = [1, 1]} : vector<8x384xf32> to vector<8x128xf32>
    %337 = vector.extract_strided_slice %331 {offsets = [0, 0], sizes = [8, 128], strides = [1, 1]} : vector<8x384xf32> to vector<8x128xf32>
    %338 = arith.addf %336, %337 : vector<8x128xf32>
    %339 = arith.negf %338 : vector<8x128xf32>
    %340 = math.exp %339 : vector<8x128xf32>
    %cst_122 = arith.constant 1.000000e+00 : f32
    %341 = vector.broadcast %cst_122 : f32 to vector<8x128xf32>
    %342 = arith.addf %341, %340 : vector<8x128xf32>
    %343 = arith.divf %341, %342 : vector<8x128xf32>
    %344 = vector.extract_strided_slice %335 {offsets = [0, 128], sizes = [8, 128], strides = [1, 1]} : vector<8x384xf32> to vector<8x128xf32>
    %345 = vector.extract_strided_slice %331 {offsets = [0, 128], sizes = [8, 128], strides = [1, 1]} : vector<8x384xf32> to vector<8x128xf32>
    %346 = arith.addf %344, %345 : vector<8x128xf32>
    %347 = arith.negf %346 : vector<8x128xf32>
    %348 = math.exp %347 : vector<8x128xf32>
    %cst_123 = arith.constant 1.000000e+00 : f32
    %349 = vector.broadcast %cst_123 : f32 to vector<8x128xf32>
    %350 = arith.addf %349, %348 : vector<8x128xf32>
    %351 = arith.divf %349, %350 : vector<8x128xf32>
    %352 = vector.extract_strided_slice %335 {offsets = [0, 256], sizes = [8, 128], strides = [1, 1]} : vector<8x384xf32> to vector<8x128xf32>
    %353 = vector.extract_strided_slice %331 {offsets = [0, 256], sizes = [8, 128], strides = [1, 1]} : vector<8x384xf32> to vector<8x128xf32>
    %354 = vector.broadcast %16 : vector<1x128xf32> to vector<8x128xf32>
    %355 = arith.addf %353, %354 : vector<8x128xf32>
    %356 = arith.mulf %343, %355 : vector<8x128xf32>
    %357 = arith.addf %352, %356 : vector<8x128xf32>
    %358 = math.tanh %357 : vector<8x128xf32>
    %cst_124 = arith.constant 1.000000e+00 : f32
    %359 = vector.broadcast %cst_124 : f32 to vector<8x128xf32>
    %360 = arith.subf %359, %351 : vector<8x128xf32>
    %361 = arith.mulf %360, %358 : vector<8x128xf32>
    %362 = arith.mulf %351, %329 : vector<8x128xf32>
    %363 = arith.addf %361, %362 : vector<8x128xf32>
    %c0_125 = arith.constant 0 : index
    %c0_126 = arith.constant 0 : index
    %364 = vector.load %arg9[%c0_125, %c0_126] : memref<8x128xf32, #tpu.memory_space<vmem>>, vector<8x128xf32>
    tpu.vector_store %arg9[%c0_125, %c0_126], %363 {strides = array<i32>} : memref<8x128xf32, #tpu.memory_space<vmem>>, vector<8x128xf32>,
    %365 = arith.index_cast %328 : i32 to index
    %c0_127 = arith.constant 0 : index
    %c0_128 = arith.constant 0 : index
    %366 = vector.load %arg7[%365, %c0_127, %c0_128] : memref<8x8x128xf32, #tpu.memory_space<vmem>>, vector<1x8x128xf32>
    %367 = vector.shape_cast %366 : vector<1x8x128xf32> to vector<8x128xf32>
    %368 = vector.shape_cast %363 : vector<8x128xf32> to vector<1x8x128xf32>
    tpu.vector_store %arg7[%365, %c0_127, %c0_128], %368 {strides = array<i32>} : memref<8x8x128xf32, #tpu.memory_space<vmem>>, vector<1x8x128xf32>,
    %c8_i32_129 = arith.constant 8 : i32
    %c0_i32_130 = arith.constant 0 : i32
    %369 = arith.cmpi eq, %arg1, %c0_i32_130 : i32
    %370 = arith.extui %369 : i1 to i32
    %c0_i32_131 = arith.constant 0 : i32
    %371 = arith.cmpi ne, %370, %c0_i32_131 : i32
    scf.if %371 {
      %c0_132 = arith.constant 0 : index
      %c0_133 = arith.constant 0 : index
      %372 = vector.load %arg9[%c0_132, %c0_133] : memref<8x128xf32, #tpu.memory_space<vmem>>, vector<8x128xf32>
      %c0_134 = arith.constant 0 : index
      %c0_135 = arith.constant 0 : index
      %c0_136 = arith.constant 0 : index
      %373 = vector.load %arg8[%c0_134, %c0_135, %c0_136] : memref<1x8x128xf32, #tpu.memory_space<vmem>>, vector<1x8x128xf32>
      %374 = vector.shape_cast %373 : vector<1x8x128xf32> to vector<8x128xf32>
      %375 = vector.shape_cast %372 : vector<8x128xf32> to vector<1x8x128xf32>
      tpu.vector_store %arg8[%c0_134, %c0_135, %c0_136], %375 {strides = array<i32>} : memref<1x8x128xf32, #tpu.memory_space<vmem>>, vector<1x8x128xf32>,
    } else {
    }
    return
  }
  func.func @transform_0(%arg0: i32, %arg1: i32) -> (i32, i32, i32) {
    %c2_i32 = arith.constant 2 : i32
    %0 = arith.muli %c2_i32, %arg1 : i32
    %c0_i32 = arith.constant 0 : i32
    %1 = arith.subi %c0_i32, %0 : i32
    %2 = arith.muli %arg0, %1 : i32
    %3 = arith.addi %arg1, %2 : i32
    %c0_i32_0 = arith.constant 0 : i32
    %c0_i32_1 = arith.constant 0 : i32
    %c0_i32_2 = arith.constant 0 : i32
    return %3, %c0_i32_0, %c0_i32_1 : i32, i32, i32
  }
  func.func @transform_1(%arg0: i32, %arg1: i32) -> (i32, i32, i32) {
    %c0_i32 = arith.constant 0 : i32
    %c0_i32_0 = arith.constant 0 : i32
    %c0_i32_1 = arith.constant 0 : i32
    return %arg0, %c0_i32, %c0_i32_0 : i32, i32, i32
  }
  func.func @transform_2(%arg0: i32, %arg1: i32) -> (i32, i32, i32) {
    %c0_i32 = arith.constant 0 : i32
    %c0_i32_0 = arith.constant 0 : i32
    %c0_i32_1 = arith.constant 0 : i32
    return %arg0, %c0_i32, %c0_i32_0 : i32, i32, i32
  }
  func.func @transform_3(%arg0: i32, %arg1: i32) -> (i32, i32, i32) {
    %c0_i32 = arith.constant 0 : i32
    %c0_i32_0 = arith.constant 0 : i32
    %c0_i32_1 = arith.constant 0 : i32
    return %arg0, %c0_i32, %c0_i32_0 : i32, i32, i32
  }
  func.func @transform_4(%arg0: i32, %arg1: i32) -> (i32, i32, i32) {
    %c0_i32 = arith.constant 0 : i32
    %c0_i32_0 = arith.constant 0 : i32
    %c0_i32_1 = arith.constant 0 : i32
    return %arg0, %c0_i32, %c0_i32_0 : i32, i32, i32
  }
  func.func @transform_5(%arg0: i32, %arg1: i32) -> (i32, i32, i32) {
    %c2_i32 = arith.constant 2 : i32
    %0 = arith.muli %c2_i32, %arg1 : i32
    %c0_i32 = arith.constant 0 : i32
    %1 = arith.subi %c0_i32, %0 : i32
    %2 = arith.muli %arg0, %1 : i32
    %3 = arith.addi %arg1, %2 : i32
    %c0_i32_0 = arith.constant 0 : i32
    %c0_i32_1 = arith.constant 0 : i32
    return %3, %c0_i32_0, %arg0 : i32, i32, i32
  }
  func.func @transform_6(%arg0: i32, %arg1: i32) -> (i32, i32, i32) {
    %c0_i32 = arith.constant 0 : i32
    %c0_i32_0 = arith.constant 0 : i32
    %c0_i32_1 = arith.constant 0 : i32
    return %arg0, %c0_i32, %c0_i32_0 : i32, i32, i32
  }
}

</mosaic_0001>

<bundles_post_ra>
// kernel: encoder_rnn_forward.3
= control target key start
LH: loop header
LB: loop body
LE: loop exit
PB: predicated region body
PF: predicated region fallthrough
CT: control target
= control target key end

     0   :  { %s342_s1 = inlined_call_operand.vmem [shape: bf16[256,128], index: 1, kind: input, shape index: {}]   ;;  %s343_s0 = inlined_call_operand.vmem [shape: bf16[8,256], index: 0, kind: input, shape index: {}]   ;;  %s344_s2 = inlined_call_operand.vmem [shape: f32[1,128], index: 2, kind: input, shape index: {}]   ;;  %s345_s3 = inlined_call_operand.vmem [shape: f32[8,128], index: 3, kind: output, shape index: {}]  }
   0x1   :  { %v245_v0 = vld [vmem:[%s342_s1 + $0x78] sm:$0xff]   ;;  %v247_v2 = vld [vmem:[%s342_s1 + $0x70] sm:$0xff]   ;;  %v249_v4 = vld [vmem:[%s342_s1 + $0x68] sm:$0xff]  }
   0x2   :  { %v246_v1 = vld [vmem:[%s342_s1 + $0x38] sm:$0xff]   ;;  %223 = vmatprep.subr.bf16.mxu0 %v245_v0  ;;  %v248_v3 = vld [vmem:[%s342_s1 + $0x30] sm:$0xff]   ;;  %v250_v5 = vld [vmem:[%s342_s1 + $0x28] sm:$0xff]  }
   0x3   :  { %224 = vmatpush3.bf16.msra.mxu0 %v246_v1  ;;  %v251_v6 = vld [vmem:[%s342_s1 + $0x60] sm:$0xff]   ;;  %v253_v8 = vld [vmem:[%s342_s1 + $0x58] sm:$0xff]   ;;  %v255_v10 = vld [vmem:[%s342_s1 + $0x50] sm:$0xff]  }
   0x4   :  { %225 = vmatprep.subr.bf16.mxu0 %v247_v2  ;;  %v252_v7 = vld [vmem:[%s342_s1 + $0x20] sm:$0xff]   ;;  %v254_v9 = vld [vmem:[%s342_s1 + $0x18] sm:$0xff]   ;;  %v256_v13 = vld [vmem:[%s342_s1 + $0x10] sm:$0xff]  }
   0x5   :  { %v15_v11 = vld [vmem:[%s343_s0] sm:$0xff]  ;;  %v257_v14 = vld [vmem:[%s342_s1 + $0x48] sm:$0xff]  }
   0x6   :  { %v206_v12 = vcombine.high %v15_v11, %v15_v11  ;;  %v258_v15 = vld [vmem:[%s342_s1 + $0x8] sm:$0xff]   ;;  %v259_v16 = vld [vmem:[%s342_s1 + $0x40] sm:$0xff]   ;;  %v205_v18 = vcombine.low %v15_v11, %v15_v11 }
   0x7   :  { %226 = vmatpush3.bf16.msra.mxu0 %v248_v3  ;;  %v260_v17 = vld [vmem:[%s342_s1] sm:$0xff]  }
   0x8   :  { %227 = vmatprep.subr.bf16.mxu0 %v249_v4  ;;  %190 = vmatprep.mubr.bf16.mxu0 %v206_v12  ;;  %v204_v20 = vld [vmem:[%s344_s2] ss:$0 sm:$0xff] }
   0xb   :  { %228 = vmatpush3.bf16.msra.mxu0 %v250_v5 }
   0xc   :  { %229 = vmatprep.subr.bf16.mxu0 %v251_v6 }
   0xf   :  { %230 = vmatpush3.bf16.msra.mxu0 %v252_v7 }
  0x10   :  { %231 = vmatprep.subr.bf16.mxu0 %v253_v8 }
  0x13   :  { %232 = vmatpush3.bf16.msra.mxu0 %v254_v9 }
  0x14   :  { %233 = vmatprep.subr.bf16.mxu0 %v255_v10 }
  0x17   :  { %234 = vmatpush3.bf16.msra.mxu0 %v256_v13 }
  0x18   :  { %235 = vmatprep.subr.bf16.mxu0 %v257_v14 }
  0x1b   :  { %236 = vmatpush3.bf16.msra.mxu0 %v258_v15 }
  0x1c   :  { %237 = vmatprep.subr.bf16.mxu0 %v259_v16 }
  0x1f   :  { %238 = vmatpush3.bf16.msra.mxu0 %v260_v17 }
  0x22   :  { %191 = vmatmul.mubr.bf16.vlgmr.msra.gmra.mxu0 %v205_v18 }
  0xe2   :  { %v239_v19 = vpop.f32.mrf.mxu0 }
  0xe4   :  { %v240_v21 = vpop.f32.mrf.mxu0 }
  0xe5   :  { %v241_v22 = vadd.f32 %v240_v21, %v239_v19 }
  0xe6   :  { %v242_v23 = vpop.f32.mrf.mxu0 }
  0xe7   :  { %v193_v24 = vadd.f32 %v241_v22, %v204_v20 }
  0xe8   :  { %v243_v25 = vpop.f32.mrf.mxu0 }
  0xe9   :  { %263 = vtanh.f32 %v193_v24 }
  0xf6   :  { %v264_v26 = vpop.eup %263 }
  0xf7   :  { %199 = vst [vmem:[%s345_s3] sm:$0xff] %v264_v26 }

// kernel: encoder_rnn_forward.2
= control target key start
LH: loop header
LB: loop body
LE: loop exit
PB: predicated region body
PF: predicated region fallthrough
CT: control target
= control target key end

     0   :  { %s3756_s0 = inlined_call_operand.vmem [shape: bf16[8,8,128], index: 0, kind: input, shape index: {}]   ;;  %s3757_s1 = inlined_call_operand.hbm [shape: bf16[2,128,384], index: 1, kind: input, shape index: {}]   ;;  %s3758_s2 = inlined_call_operand.hbm [shape: bf16[2,128,384], index: 2, kind: input, shape index: {}]   ;;  %s3759_s3 = inlined_call_operand.vmem [shape: f32[2,1,384], index: 3, kind: input, shape index: {}]   ;;  %s3760_s4 = inlined_call_operand.vmem [shape: f32[2,1,128], index: 4, kind: input, shape index: {}]   ;;  %s3761_s5 = inlined_call_operand.vmem [shape: f32[8,8,256], index: 5, kind: output, shape index: {0}]   ;;  %s3762_s6 = inlined_call_operand.vmem [shape: f32[2,8,128], index: 6, kind: output, shape index: {1}]  }
   0x1   :  { %3764 = sst [smem:[#allocation12_spill]] %s3757_s1 }
   0x2   :  { %12 = vsyncpa [#allocation5], 0 }
   0x3   :  { %14 = vsyncpa [#allocation5 + $0x1], 0 }
   0x4   :  { %15 = vsyncpa [#allocation7], 0 }
   0x5   :  { %17 = vsyncpa [#allocation7 + $0x1], 0  ;;  %s3008_s21 = smov 0   ;;  %s3010_s22 = smov 0  }
   0x6   :  { %s3012_s23 = smov 0   ;;  %s3014_s24 = smov 0  }
   0x7   :  { %s3016_s25 = smov 0   ;;  %s3018_s26 = smov 0  }
   0x8 LB: > { %s2204_s27 = sadd.s32 4294967295, %s2963_s26   ;;  %s35_s28 = sadd.s32 1, %s2959_s25  ;;  %s2963_s26 = sphi %s3018_s26, %s23_s26   ;;  %s2959_s25 = sphi %s3016_s25, %s3777_s25   ;;  %s2955_s24 = sphi %s3014_s24, %s3776_s24   ;;  %s2951_s23 = sphi %s3012_s23, %s3775_s23   ;;  %s2947_s22 = sphi %s3010_s22, %s3774_s22   ;;  %s2943_s21 = sphi %s3008_s21, %s3773_s21  }
   0x9   : > { %p37_p0 = scmp.ge.s32.totalorder %s35_s28, 2  ;;  %s76_s29 = sadd.s32 1, %s2951_s23 }
   0xa   : > { %p83_p1 = scmp.ne.s32.totalorder %s2951_s23, %s2947_s22  ;;  %p84_p2 = scmp.eq.s32.totalorder %s2963_s26, 0 }
   0xb   : > { %s3779_s28 = smov (%p37_p0, %s35_s28), 0  ;;  %p89_p4 = scmp.ne.s32.totalorder %s2947_s22, %s2943_s21 }
   0xc   : > { %3765 = sst [smem:[#allocation11_spill]] %s3779_s28  ;;  %p3044_p3 = por %p84_p2, %p83_p1 }
   0xd   : > { %s73_s7 = ssub.s32 %s2959_s25, %s3779_s28  ;;  %p90_p5 = scmp.eq.s32.totalorder %s2204_s27, 0 }
   0xe   : > { %p74_p6 = scmp.eq.s32.totalorder %s73_s7, 0  ;;  %p201_p7 = scmp.eq.s32.totalorder %s2204_s27, 1 }
   0xf   : > { %p3051_p8 = por %p90_p5, %p89_p4  ;;  %p2625_p10 = scmp.lt.s32.totalorder %s2963_s26, 2 }
  0x10   : > { %s3056_s9 = scalar_select %p74_p6, %s2951_s23, %s76_s29  }
  0x11   : > { %p3058_p9 = por %p201_p7, %p83_p1  ;;  %s3064_s11 = sand.u32 1, %s2951_s23  }
  0x12   : > { %s2609_s12 = smul.u32 3072, %s2959_s25  ;;  %s3769_s1 = sld [smem:[#allocation12_spill]] }
  0x13   : > { %s2608_s13 = smul.u32 192, %s3064_s11  ;;  %p3075_p11 = pnand %p2625_p10, %p3044_p3 }
  0x14   : > { %s271_s20 = scalar_lea.sflag [#allocation5], %s3064_s11  ;;  %s2965_s27 = smov [#allocation4]  }
  0x15   : > { %s274_s18 = scalar_lea.vmem [#allocation4], %s2608_s13  ;;  %p2855_p12 = pneg %p3075_p11 }
  0x16   : > { %s281_s19 = sshll.u32 %s274_s18, 4  ;;  %s2871_s29 = sshll.u32 %s2965_s27, 4  ;;  %s282_s19 = int_to_ptr.vmem [resolvable:$true] %s281_s19  ;;  %s2872_s29 = int_to_ptr.vmem [resolvable:$false] %s2871_s29 }
  0x17   : > { %s2866_s21 = scalar_lea.vmem %s282_s19, 3072  ;;  %s2873_s30 = scalar_lea.vmem %s2872_s29, 6144 }
  0x18   : > { %s280_s16 = scalar_lea.hbm %s3769_s1, %s2609_s12  ;;  %p2867_p13 = scmp.ne.s32.totalorder %s282_s19, %s2866_s21 }
  0x19   : > { %p2874_p2 = scmp.lt.s32.totalorder %s282_s19, %s2872_s29  ;;  %p2875_p3 = scmp.lt.s32.totalorder %s2873_s30, %s2866_s21 }
  0x1a   : > { %p2869_p0 = pnand %p2867_p13, %p2855_p12 }
  0x1b   : > { %p2876_p4 = por %p2875_p3, %p2874_p2 }
  0x1c   : > { %p2870_p1 = pneg %p2869_p0 }
  0x1e   : > { %p2877_p5 = pnand %p2876_p4, %p2870_p1 }
  0x20   : > { %2880 = shalt.err (!%p2877_p5)
}
  0x21   : > { %s2966_s7 = smov 192   ;;  %s2967_s14 = smov 12  }
  0x22   : > { %2621 = dma.hbm_to_vmem [thread:$0]  (!%p3075_p11), %s280_s16, 3072, %s282_s19, %s271_s20, %s2966_s7, %s2966_s7, %s2967_s14  }
  0x23   : > { %p2211_p6 = scmp.ge.s32.totalorder %s2963_s26, 1  ;;  %p323_p7 = scmp.lt.s32.totalorder %s2963_s26, 3 }
  0x24   : > { %s301_s27 = scalar_lea.hbm %s3758_s2, %s2609_s12  ;;  %s295_s29 = scalar_lea.vmem [#allocation6], %s2608_s13 }
  0x25   : > { %p3089_p10 = pnand %p2211_p6, %p323_p7  ;;  %s302_s30 = sshll.u32 %s295_s29, 4  ;;  %s303_s30 = int_to_ptr.vmem [resolvable:$true] %s302_s30 }
  0x26   : > { %s292_s1 = scalar_lea.sflag [#allocation7], %s3064_s11  ;;  %s2894_s28 = scalar_lea.vmem %s303_s30, 3072 }
  0x27   : > { %p2895_p13 = scmp.ne.s32.totalorder %s303_s30, %s2894_s28  ;;  %s2968_s16 = smov [#allocation6]  }
  0x28   : > { %s2899_s19 = sshll.u32 %s2968_s16, 4  ;;  %s2900_s19 = int_to_ptr.vmem [resolvable:$false] %s2899_s19 }
  0x29   : > { %p2897_p0 = pnand %p2895_p13, %p2855_p12  ;;  %s2901_s20 = scalar_lea.vmem %s2900_s19, 6144 }
  0x2a   : > { %p2902_p2 = scmp.lt.s32.totalorder %s303_s30, %s2900_s19  ;;  %p2903_p3 = scmp.lt.s32.totalorder %s2901_s20, %s2894_s28 }
  0x2b   : > { %p2898_p1 = pneg %p2897_p0 }
  0x2c   : > { %p2904_p4 = por %p2903_p3, %p2902_p2 }
  0x2e   : > { %p2905_p5 = pnand %p2904_p4, %p2898_p1 }
  0x30   : > { %2908 = shalt.err (!%p2905_p5)
}
  0x31   : > { %2624 = dma.hbm_to_vmem [thread:$0]  (!%p3075_p11), %s301_s27, 3072, %s303_s30, %s292_s1, %s2966_s7, %s2966_s7, %s2967_s14  }
  0x32   : > { %327 = sbr.rel (%p3089_p10) target bundleno = 2149 (0x865), region = 40  ;;  %s3107_s11 = sand.u32 (!%p3089_p10), 1, %s2947_s22  }
  0x33   : > { %s2612_s12 = smul.u32 (!%p3089_p10), 192, %s3107_s11  ;;  %s330_s13 = scalar_lea.sflag (!%p3089_p10), [#allocation5], %s3107_s11 }
  0x35   : > { %s3111_s18 = scalar_lea.vmem (!%p3089_p10), [#allocation4], %s2612_s12 }
  0x37   : > { %2934 = dma.done.wait (%p3051_p8), %s330_s13, 3072  }
  0x38   : > { %2936 = vsyncadd (%p3051_p8), %s330_s13, 4294964224  ;;  %s339_s1 = scalar_lea.sflag [#allocation7], %s3107_s11  ;;  %s3118_s28 = scalar_lea.vmem [#allocation6], %s2612_s12 }
  0x39   : > { %2938 = dma.done.wait (%p3051_p8), %s339_s1, 3072  }
  0x3a   : > { %2940 = vsyncadd (%p3051_p8), %s339_s1, 4294964224  ;;  %v2969_v0 = vmov 0   ;;  %v2680_v1 = vld [vmem:[%s3111_s18 + $0xac] ss:$12 sps:$4 sm:$0xff]   ;;  %v2682_v2 = vld [vmem:[%s3111_s18 + $0xa8] ss:$12 sps:$4 sm:$0xff]   ;;  %v473_v55 = vlaneseq }
  0x3b   : > { %672 = vmatprep.mubr.bf16.mxu0 %v2969_v0  ;;  %640 = vmatprep.subr.bf16.mxu0 %v2680_v1  ;;  %v2683_v3 = vld [vmem:[%s3111_s18 + $0x94] ss:$12 sps:$4 sm:$0xff]   ;;  %v2685_v4 = vld [vmem:[%s3111_s18 + $0x90] ss:$12 sps:$4 sm:$0xff]   ;;  %v2688_v7 = vld [vmem:[%s3111_s18 + $0x78] ss:$12 sps:$4 sm:$0xff]  }
  0x3c   : > { %641 = vmatpush1.bf16.msra.mxu0 %v2682_v2  ;;  %v2686_v5 = vld [vmem:[%s3111_s18 + $0x7c] ss:$12 sps:$4 sm:$0xff]   ;;  %v2693_v8 = vld [vmem:[%s3111_s18 + $0x98] ss:$12 sps:$4 sm:$0xff]   ;;  %v2697_v10 = vld [vmem:[%s3111_s18 + $0x80] ss:$12 sps:$4 sm:$0xff]  }
  0x3d   : > { %642 = vmatprep.subr.bf16.mxu0 %v2683_v3  ;;  %v2689_v6 = vld [vmem:[%s3111_s18 + $0xb0] ss:$12 sps:$4 sm:$0xff]   ;;  %v2692_v11 = vld [vmem:[%s3111_s18 + $0x60] ss:$12 sps:$4 sm:$0xff]   ;;  %v2701_v13 = vld [vmem:[%s3111_s18 + $0x68] ss:$12 sps:$4 sm:$0xff]  }
  0x3e   : > { %2424 = vmatprep.subr.bf16.mxu1 %v2689_v6  ;;  %v2690_v9 = vld [vmem:[%s3111_s18 + $0x64] ss:$12 sps:$4 sm:$0xff]   ;;  %v2694_v12 = vld [vmem:[%s3111_s18 + $0x4c] ss:$12 sps:$4 sm:$0xff]   ;;  %v2696_v14 = vld [vmem:[%s3111_s18 + $0x48] ss:$12 sps:$4 sm:$0xff]  }
  0x3f   : > { %2425 = vmatpush3.bf16.msra.mxu1 %v2689_v6  ;;  %v2698_v15 = vld [vmem:[%s3111_s18 + $0x34] ss:$12 sps:$4 sm:$0xff]   ;;  %v2705_v16 = vld [vmem:[%s3111_s18 + $0x50] ss:$12 sps:$4 sm:$0xff]   ;;  %v2709_v20 = vld [vmem:[%s3111_s18 + $0x38] ss:$12 sps:$4 sm:$0xff]  }
  0x40   : > { %643 = vmatpush1.bf16.msra.mxu0 %v2685_v4  ;;  %2426 = vmatprep.subr.bf16.mxu1 %v2693_v8  ;;  %v2700_v17 = vld [vmem:[%s3111_s18 + $0x30] ss:$12 sps:$4 sm:$0xff]   ;;  %v2710_v19 = vld [vmem:[%s3756_s0] sm:$0xff]   ;;  %v3152_v25 = vld [vmem:[%s3118_s28 + $0xac] ss:$12 sps:$4 sm:$0xff]   ;;  %v2970_v33 = vmov 0.0  }
  0x41   : > { %644 = vmatprep.subr.bf16.mxu0 %v2686_v5  ;;  %v2702_v18 = vld [vmem:[%s3111_s18 + $0x1c] ss:$12 sps:$4 sm:$0xff]   ;;  %2440 = vmatprep.mubr.bf16.mxu1 %v2710_v19  ;;  %v2704_v21 = vld [vmem:[%s3111_s18 + $0x18] ss:$12 sps:$4 sm:$0xff]   ;;  %v2711_v23 = vld [vmem:[%s3111_s18 + $0x20] ss:$12 sps:$4 sm:$0xff]  }
  0x42   : > { %v2706_v22 = vld [vmem:[%s3111_s18 + $0x4] ss:$12 sps:$4 sm:$0xff]   ;;  %v2708_v24 = vld [vmem:[%s3111_s18] ss:$12 sps:$4 sm:$0xff]   ;;  %v2715_v26 = vld [vmem:[%s3111_s18 + $0x8] ss:$12 sps:$4 sm:$0xff]  }
  0x43   : > { %2427 = vmatpush3.bf16.msra.mxu1 %v2693_v8  ;;  %v3156_v27 = vld [vmem:[%s3118_s28 + $0xa8] ss:$12 sps:$4 sm:$0xff]   ;;  %v3163_v29 = vld [vmem:[%s3118_s28 + $0x90] ss:$12 sps:$4 sm:$0xff]   ;;  %v3183_v35 = vld [vmem:[%s3118_s28 + $0x78] ss:$12 sps:$4 sm:$0xff]  }
  0x44   : > { %645 = vmatpush1.bf16.msra.mxu0 %v2688_v7  ;;  %2428 = vmatprep.subr.bf16.mxu1 %v2697_v10  ;;  %v3160_v28 = vld [vmem:[%s3118_s28 + $0x94] ss:$12 sps:$4 sm:$0xff]   ;;  %v2719_v30 = vld [vmem:[%s3756_s0 + $0x8] sm:$0xff]   ;;  %v3179_v34 = vld [vmem:[%s3118_s28 + $0xb0] ss:$12 sps:$4 sm:$0xff]   ;;  %vm2971_vm0 = vmmov 0  }
  0x45   : > { %646 = vmatprep.subr.bf16.mxu0 %v2690_v9  ;;  %v3171_v31 = vld [vmem:[%s3118_s28 + $0x7c] ss:$12 sps:$4 sm:$0xff]   ;;  %v2726_v32 = vld [vmem:[%s3756_s0 + $0x10] sm:$0xff]   ;;  %v3191_v37 = vld [vmem:[%s3118_s28 + $0x98] ss:$12 sps:$4 sm:$0xff]   ;;  %v2972_v54 = vmov 0.0|0.0  }
  0x46   : > { %v3187_v36 = vld [vmem:[%s3118_s28 + $0x64] ss:$12 sps:$4 sm:$0xff]   ;;  %v3197_v38 = vld [vmem:[%s3118_s28 + $0x60] ss:$12 sps:$4 sm:$0xff]   ;;  %v2727_v39 = vld [vmem:[%s3756_s0 + $0x18] sm:$0xff]   ;;  %p409_p8 = scmp.lt.s32.totalorder %s2955_s24, 1 }
  0x47   : > { %2429 = vmatpush3.bf16.msra.mxu1 %v2697_v10  ;;  %v3204_v40 = vld [vmem:[%s3118_s28 + $0x4c] ss:$12 sps:$4 sm:$0xff]   ;;  %v3213_v42 = vld [vmem:[%s3118_s28 + $0x48] ss:$12 sps:$4 sm:$0xff]   ;;  %v3229_v45 = vld [vmem:[%s3118_s28 + $0x30] ss:$12 sps:$4 sm:$0xff]  }
  0x48   : > { %647 = vmatpush1.bf16.msra.mxu0 %v2692_v11  ;;  %2430 = vmatprep.subr.bf16.mxu1 %v2701_v13  ;;  %v3208_v41 = vld [vmem:[%s3118_s28 + $0x80] ss:$12 sps:$4 sm:$0xff]   ;;  %v3223_v44 = vld [vmem:[%s3118_s28 + $0x68] ss:$12 sps:$4 sm:$0xff]   ;;  %v3237_v47 = vld [vmem:[%s3118_s28 + $0x50] ss:$12 sps:$4 sm:$0xff]  }
  0x49   : > { %648 = vmatprep.subr.bf16.mxu0 %v2694_v12  ;;  %v3217_v43 = vld [vmem:[%s3118_s28 + $0x34] ss:$12 sps:$4 sm:$0xff]   ;;  %v3233_v46 = vld [vmem:[%s3118_s28 + $0x1c] ss:$12 sps:$4 sm:$0xff]   ;;  %v3242_v48 = vld [vmem:[%s3118_s28 + $0x18] ss:$12 sps:$4 sm:$0xff]  }
  0x4a   : > { %v3246_v49 = vld [vmem:[%s3118_s28 + $0x4] ss:$12 sps:$4 sm:$0xff]   ;;  %v3255_v51 = vld [vmem:[%s3118_s28] ss:$12 sps:$4 sm:$0xff]   ;;  %v3268_v53 = vld [vmem:[%s3118_s28 + $0x8] ss:$12 sps:$4 sm:$0xff]  }
  0x4b   : > { %2431 = vmatpush3.bf16.msra.mxu1 %v2701_v13  ;;  %v3250_v50 = vld [vmem:[%s3118_s28 + $0x38] ss:$12 sps:$4 sm:$0xff]   ;;  %v3261_v52 = vld [vmem:[%s3118_s28 + $0x20] ss:$12 sps:$4 sm:$0xff]   ;;  %s3310_s30 = scalar_select %p409_p8, %s2955_s24, 1  ;;  %v474_v56 = vshrl.u32 %v473_v55, 7 }
  0x4c   : > { %649 = vmatpush1.bf16.msra.mxu0 %v2696_v14  ;;  %2432 = vmatprep.subr.bf16.mxu1 %v2705_v16  ;;  %s1047_s13 = smul.u32 56, %s2955_s24  ;;  %s2212_s15 = sshll.u32 %s3107_s11, 6 }
  0x4d   : > { %650 = vmatprep.subr.bf16.mxu0 %v2698_v15  ;;  %s2613_s16 = smul.u32 3, %s3310_s30  ;;  %v475_v57 = vsub.s32 0, %v474_v56  ;;  %v479_v59 = vsub.s32 1, %v474_v56  ;;  %v483_v61 = vsub.s32 2, %v474_v56  ;;  %s3343_s14 = scalar_lea.vmem %s3760_s4, %s3310_s30 }
  0x4e   : > { %s1048_s18 = sshra.s32 %s1047_s13, 3  ;;  %s3350_s21 = scalar_lea.vmem [#allocation8], %s2212_s15 }
  0x4f   : > { %2433 = vmatpush3.bf16.msra.mxu1 %v2705_v16  ;;  %s412_s12 = scalar_lea.vmem %s3759_s3, %s2613_s16  ;;  %s2315_s1 = smul.u32 24, %s1048_s18 }
  0x50   : > { %651 = vmatpush1.bf16.msra.mxu0 %v2700_v17  ;;  %2434 = vmatprep.subr.bf16.mxu1 %v2709_v20  ;;  %v471_v58 = vld [vmem:[%s412_s12] sm:$0x7]  ;;  %s1086_s27 = scalar_lea.vmem %s3350_s21, %s1047_s13 [#allocation8]  ;;  %s2335_s11 = smul.u32 40, %s2955_s24 }
  0x51   : > { %652 = vmatprep.subr.bf16.mxu0 %v2702_v18  ;;  %v3316_v60 = vrot.slane %v471_v58, %v475_v57  ;;  %v3318_v62 = vrot.slane %v471_v58, %v479_v59  ;;  %v484_v3 = vrot.slane %v471_v58, %v483_v61  ;;  %s1052_s8 = scalar_lea.vmem [#allocation3], %s2315_s1  ;;  %s2336_s13 = smul.u32 24, %s2955_s24 }
  0x52   : > { %s2317_s29 = sadd.s32 8, %s2335_s11  ;;  %s2084_s12 = scalar_lea.vmem %s3350_s21, %s2335_s11 [#allocation8] }
  0x53   : > { %2435 = vmatpush3.bf16.msra.mxu1 %v2709_v20  ;;  %s1174_s16 = sshra.s32 %s2317_s29, 3  ;;  %s2320_s18 = sadd.s32 16, %s2336_s13 }
  0x54   : > { %653 = vmatpush1.bf16.msra.mxu0 %v2704_v21  ;;  %2436 = vmatprep.subr.bf16.mxu1 %v2711_v23  ;;  %s2318_s19 = smul.u32 24, %s1174_s16  ;;  %s1293_s1 = sshra.s32 %s2320_s18, 3 }
  0x55   : > { %654 = vmatprep.subr.bf16.mxu0 %v2706_v22  ;;  %s2090_s7 = scalar_lea.vmem %s3350_s21, %s2336_s13 [#allocation8]  ;;  %s3492_s15 = sshll.u32 %s2955_s24, 3 }
  0x56   : > { %s1178_s20 = scalar_lea.vmem [#allocation3], %s2318_s19  ;;  %s2095_s19 = scalar_lea.vmem %s3350_s21, %s3492_s15 [#allocation8] }
  0x57   : > { %2437 = vmatpush3.bf16.msra.mxu1 %v2711_v23 }
  0x58   : > { %655 = vmatpush1.bf16.msra.mxu0 %v2708_v24  ;;  %2438 = vmatprep.subr.bf16.mxu1 %v2715_v26 }
  0x59   : > { %966 = vmatprep.subr.bf16.mxu0 %v3152_v25 }
  0x5b   : > { %673 = vmatmul.mubr.bf16.vlgmr.msra.gmra.mxu0 %v2710_v19  ;;  %2439 = vmatpush3.bf16.msra.mxu1 %v2715_v26 }
  0x5c   : > { %967 = vmatpush1.bf16.msra.mxu0 %v3156_v27  ;;  %682 = vmatprep.mubr.bf16.mxu0 %v2969_v0 }
  0x5d   : > { %968 = vmatprep.subr.bf16.mxu0 %v3160_v28  ;;  %2448 = vmatprep.subr.bf16.mxu1 %v2970_v33 }
  0x5e   : > { %2441 = vmatmul.mubr.bf16.vlgmr.msra.gmra.mxu1 %v2719_v30 }
  0x5f   : > { %2444 = vmatprep.mubr.bf16.mxu1 %v2726_v32  ;;  %2449 = vmatpush3.bf16.msra.mxu1 %v3179_v34 }
  0x60   : > { %969 = vmatpush1.bf16.msra.mxu0 %v3163_v29  ;;  %2450 = vmatprep.subr.bf16.mxu1 %v2970_v33 }
  0x61   : > { %970 = vmatprep.subr.bf16.mxu0 %v3171_v31 }
  0x63   : > { %683 = vmatmul.mubr.bf16.gmra.mxu0 %v2719_v30  ;;  %2451 = vmatpush3.bf16.msra.mxu1 %v3191_v37 }
  0x64   : > { %971 = vmatpush1.bf16.msra.mxu0 %v3183_v35  ;;  %692 = vmatprep.mubr.bf16.mxu0 %v2969_v0 }
  0x65   : > { %972 = vmatprep.subr.bf16.mxu0 %v3187_v36  ;;  %2452 = vmatprep.subr.bf16.mxu1 %v2970_v33 }
  0x66   : > { %2445 = vmatmul.mubr.bf16.gmra.mxu1 %v2727_v39 }
  0x67   : > { %2464 = vmatprep.mubr.msk.bf16.mxu1 %vm2971_vm0, %v2970_v33  ;;  %2453 = vmatpush3.bf16.msra.mxu1 %v3208_v41 }
  0x68   : > { %973 = vmatpush1.bf16.msra.mxu0 %v3197_v38  ;;  %2454 = vmatprep.subr.bf16.mxu1 %v2970_v33 }
  0x69   : > { %974 = vmatprep.subr.bf16.mxu0 %v3204_v40 }
  0x6b   : > { %693 = vmatmul.mubr.bf16.gmra.mxu0 %v2726_v32  ;;  %2455 = vmatpush3.bf16.msra.mxu1 %v3223_v44 }
  0x6c   : > { %975 = vmatpush1.bf16.msra.mxu0 %v3213_v42  ;;  %702 = vmatprep.mubr.bf16.mxu0 %v2969_v0 }
  0x6d   : > { %976 = vmatprep.subr.bf16.mxu0 %v3217_v43  ;;  %2456 = vmatprep.subr.bf16.mxu1 %v2970_v33 }
  0x6f   : > { %2457 = vmatpush3.bf16.msra.mxu1 %v3237_v47 }
  0x70   : > { %977 = vmatpush1.bf16.msra.mxu0 %v3229_v45  ;;  %2458 = vmatprep.subr.bf16.mxu1 %v2970_v33 }
  0x71   : > { %978 = vmatprep.subr.bf16.mxu0 %v3233_v46 }
  0x73   : > { %703 = vmatmul.mubr.bf16.gmra.mxu0 %v2727_v39  ;;  %2459 = vmatpush3.bf16.msra.mxu1 %v3250_v50 }
  0x74   : > { %979 = vmatpush1.bf16.msra.mxu0 %v3242_v48  ;;  %998 = vmatprep.mubr.bf16.mxu0 %v2969_v0 }
  0x75   : > { %980 = vmatprep.subr.bf16.mxu0 %v3246_v49  ;;  %2460 = vmatprep.subr.bf16.mxu1 %v2970_v33 }
  0x77   : > { %2461 = vmatpush3.bf16.msra.mxu1 %v3261_v52 }
  0x78   : > { %981 = vmatpush1.bf16.msra.mxu0 %v3255_v51  ;;  %2462 = vmatprep.subr.bf16.mxu1 %v2970_v33 }
  0x79   : > { %1092 = vmatprep.subr.bf16.mxu0 %v3152_v25 }
  0x7b   : > { %999 = vmatmul.mubr.bf16.vlgmr.msra.gmra.mxu0 %v2972_v54  ;;  %2463 = vmatpush3.bf16.msra.mxu1 %v3268_v53 }
  0x7c   : > { %1093 = vmatpush1.bf16.msra.mxu0 %v3156_v27  ;;  %1124 = vmatprep.mubr.bf16.mxu0 %v2969_v0 }
  0x7d   : > { %1094 = vmatprep.subr.bf16.mxu0 %v3160_v28  ;;  %2468 = vmatprep.subr.bf16.mxu1 %v2970_v33 }
  0x7e   : > { %2465 = vmatmul.mubr.bf16.vlgmr.msra.gmra.mxu1 %v2972_v54 }
  0x7f   : > { %2469 = vmatpush3.bf16.msra.mxu1 %v3179_v34  ;;  %2484 = vmatprep.mubr.msk.bf16.mxu1 %vm2971_vm0, %v2970_v33 }
  0x80   : > { %1095 = vmatpush1.bf16.msra.mxu0 %v3163_v29  ;;  %2470 = vmatprep.subr.bf16.mxu1 %v2970_v33 }
  0x81   : > { %1096 = vmatprep.subr.bf16.mxu0 %v3171_v31 }
  0x83   : > { %2471 = vmatpush3.bf16.msra.mxu1 %v3191_v37 }
  0x84   : > { %1097 = vmatpush1.bf16.msra.mxu0 %v3183_v35  ;;  %2472 = vmatprep.subr.bf16.mxu1 %v2970_v33 }
  0x85   : > { %1098 = vmatprep.subr.bf16.mxu0 %v3187_v36 }
  0x87   : > { %2473 = vmatpush3.bf16.msra.mxu1 %v3208_v41 }
  0x88   : > { %1099 = vmatpush1.bf16.msra.mxu0 %v3197_v38  ;;  %2474 = vmatprep.subr.bf16.mxu1 %v2970_v33 }
  0x89   : > { %1100 = vmatprep.subr.bf16.mxu0 %v3204_v40 }
  0x8b   : > { %2475 = vmatpush3.bf16.msra.mxu1 %v3223_v44 }
  0x8c   : > { %1101 = vmatpush1.bf16.msra.mxu0 %v3213_v42  ;;  %2476 = vmatprep.subr.bf16.mxu1 %v2970_v33 }
  0x8d   : > { %1102 = vmatprep.subr.bf16.mxu0 %v3217_v43 }
  0x8f   : > { %2477 = vmatpush3.bf16.msra.mxu1 %v3237_v47 }
  0x90   : > { %1103 = vmatpush1.bf16.msra.mxu0 %v3229_v45  ;;  %2478 = vmatprep.subr.bf16.mxu1 %v2970_v33 }
  0x91   : > { %1104 = vmatprep.subr.bf16.mxu0 %v3233_v46 }
  0x93   : > { %2479 = vmatpush3.bf16.msra.mxu1 %v3250_v50 }
  0x94   : > { %1105 = vmatpush1.bf16.msra.mxu0 %v3242_v48  ;;  %2480 = vmatprep.subr.bf16.mxu1 %v2970_v33 }
  0x95   : > { %1106 = vmatprep.subr.bf16.mxu0 %v3246_v49 }
  0x97   : > { %2481 = vmatpush3.bf16.msra.mxu1 %v3261_v52 }
  0x98   : > { %1107 = vmatpush1.bf16.msra.mxu0 %v3255_v51  ;;  %2482 = vmatprep.subr.bf16.mxu1 %v2970_v33 }
  0x99   : > { %1211 = vmatprep.subr.bf16.mxu0 %v3152_v25 }
  0x9b   : > { %2483 = vmatpush3.bf16.msra.mxu1 %v3268_v53 }
  0x9c   : > { %2488 = vmatprep.subr.bf16.mxu1 %v2970_v33 }
 0x11b   : > { %v674_v63 = vpop.f32.mrf.mxu0 }
 0x11c   : > { %v675_v1 = vadd.f32 %v674_v63, %v3316_v60 }
 0x11d   : > { %v676_v2 = vpop.f32.mrf.mxu0 }
 0x11e   : > { %778 = vst [vmem:[#allocation3] sm:$0xff] %v675_v1  ;;  %v677_v4 = vadd.f32 %v676_v2, %v3318_v62  ;;  %v2442_v7 = vpop.f32.mrf.mxu1 }
 0x11f   : > { %v678_v5 = vpop.f32.mrf.mxu0  ;;  %v756_v9 = vadd.f32 %v2442_v7, %v484_v3 }
 0x120   : > { %779 = vst [vmem:[#allocation3 + $0x8] sm:$0xff] %v677_v4  ;;  %v679_v6 = vadd.f32 %v678_v5, %v3316_v60  ;;  %v747_v11 = vpop.f32.mrf.mxu1 }
 0x121   : > { %v680_v8 = vpop.f32.mrf.mxu0  ;;  %786 = vst [vmem:[#allocation3 + $0x40] sm:$0xff] %v756_v9  ;;  %v748_v13 = vadd.f32 %v747_v11, %v484_v3 }
 0x122   : > { %781 = vst [vmem:[#allocation3 + $0x18] sm:$0xff] %v679_v6  ;;  %v681_v10 = vadd.f32 %v680_v8, %v3318_v62  ;;  %v2443_v15 = vpop.f32.mrf.mxu1 }
 0x123   : > { %v684_v12 = vpop.f32.mrf.mxu0  ;;  %780 = vst [vmem:[#allocation3 + $0x10] sm:$0xff] %v748_v13  ;;  %v759_v17 = vadd.f32 %v2443_v15, %v484_v3 }
 0x124   : > { %782 = vst [vmem:[#allocation3 + $0x20] sm:$0xff] %v681_v10  ;;  %v685_v14 = vadd.f32 %v684_v12, %v3316_v60  ;;  %v750_v19 = vpop.f32.mrf.mxu1 }
 0x125   : > { %v686_v16 = vpop.f32.mrf.mxu0  ;;  %789 = vst [vmem:[#allocation3 + $0x58] sm:$0xff] %v759_v17  ;;  %v751_v21 = vadd.f32 %v750_v19, %v484_v3 }
 0x126   : > { %784 = vst [vmem:[#allocation3 + $0x30] sm:$0xff] %v685_v14  ;;  %v687_v18 = vadd.f32 %v686_v16, %v3318_v62  ;;  %v2446_v23 = vpop.f32.mrf.mxu1 }
 0x127   : > { %v688_v20 = vpop.f32.mrf.mxu0  ;;  %783 = vst [vmem:[#allocation3 + $0x28] sm:$0xff] %v751_v21  ;;  %v772_v26 = vadd.f32 %v2446_v23, %v484_v3 }
 0x128   : > { %785 = vst [vmem:[#allocation3 + $0x38] sm:$0xff] %v687_v18  ;;  %v689_v22 = vadd.f32 %v688_v20, %v3316_v60  ;;  %v763_v32 = vpop.f32.mrf.mxu1 }
 0x129   : > { %v690_v24 = vpop.f32.mrf.mxu0  ;;  %798 = vst [vmem:[#allocation3 + $0xa0] sm:$0xff] %v772_v26  ;;  %v764_v54 = vadd.f32 %v763_v32, %v484_v3 }
 0x12a   : > { %787 = vst [vmem:[#allocation3 + $0x48] sm:$0xff] %v689_v22  ;;  %v691_v30 = vadd.f32 %v690_v24, %v3318_v62  ;;  %v2447_v56 = vpop.f32.mrf.mxu1 }
 0x12b   : > { %v694_v39 = vpop.f32.mrf.mxu0  ;;  %792 = vst [vmem:[#allocation3 + $0x70] sm:$0xff] %v764_v54  ;;  %v775_v58 = vadd.f32 %v2447_v56, %v484_v3 }
 0x12c   : > { %788 = vst [vmem:[#allocation3 + $0x50] sm:$0xff] %v691_v30  ;;  %v695_v55 = vadd.f32 %v694_v39, %v3316_v60  ;;  %v766_v61 = vpop.f32.mrf.mxu1  ;;  %v3346_v39 = vld [vmem:[%s3343_s14] ss:$0 sm:$0xff] }
 0x12d   : > { %v696_v57 = vpop.f32.mrf.mxu0  ;;  %801 = vst [vmem:[#allocation3 + $0xb8] sm:$0xff] %v775_v58  ;;  %v767_v1 = vadd.f32 %v766_v61, %v484_v3 }
 0x12e   : > { %790 = vst [vmem:[#allocation3 + $0x60] sm:$0xff] %v695_v55  ;;  %v697_v59 = vadd.f32 %v696_v57, %v3318_v62 }
 0x12f   : > { %v698_v63 = vpop.f32.mrf.mxu0  ;;  %795 = vst [vmem:[#allocation3 + $0x88] sm:$0xff] %v767_v1 }
 0x130   : > { %791 = vst [vmem:[#allocation3 + $0x68] sm:$0xff] %v697_v59  ;;  %v699_v2 = vadd.f32 %v698_v63, %v3316_v60 }
 0x131   : > { %v700_v4 = vpop.f32.mrf.mxu0 }
 0x132   : > { %793 = vst [vmem:[#allocation3 + $0x78] sm:$0xff] %v699_v2  ;;  %v701_v5 = vadd.f32 %v700_v4, %v3318_v62 }
 0x133   : > { %v704_v6 = vpop.f32.mrf.mxu0 }
 0x134   : > { %794 = vst [vmem:[#allocation3 + $0x80] sm:$0xff] %v701_v5  ;;  %v705_v7 = vadd.f32 %v704_v6, %v3316_v60 }
 0x135   : > { %v706_v8 = vpop.f32.mrf.mxu0 }
 0x136   : > { %796 = vst [vmem:[#allocation3 + $0x90] sm:$0xff] %v705_v7  ;;  %v707_v9 = vadd.f32 %v706_v8, %v3318_v62 }
 0x137   : > { %v708_v10 = vpop.f32.mrf.mxu0 }
 0x138   : > { %797 = vst [vmem:[#allocation3 + $0x98] sm:$0xff] %v707_v9  ;;  %v709_v3 = vadd.f32 %v708_v10, %v3316_v60 }
 0x139   : > { %v710_v11 = vpop.f32.mrf.mxu0 }
 0x13a   : > { %799 = vst [vmem:[#allocation3 + $0xa8] sm:$0xff] %v709_v3  ;;  %v711_v12 = vadd.f32 %v710_v11, %v3318_v62 }
 0x13b   : > { %v1000_v13 = vpop.f32.mrf.mxu0 }
 0x13c   : > { %800 = vst [vmem:[#allocation3 + $0xb0] sm:$0xff] %v711_v12 }
 0x13d   : > { %v1002_v14 = vpop.f32.mrf.mxu0 }
 0x13e   : > { %v1041_v17 = vpop.f32.mrf.mxu1 }
 0x13f   : > { %v1004_v15 = vpop.f32.mrf.mxu0  ;;  %v1076_v55 = vadd.f32 %v3346_v39, %v1041_v17 }
 0x140   : > { %v2466_v19 = vpop.f32.mrf.mxu1 }
 0x141   : > { %v1005_v16 = vpop.f32.mrf.mxu0 }
 0x142   : > { %v1044_v21 = vpop.f32.mrf.mxu1 }
 0x143   : > { %v1053_v18 = vld [vmem:[%s1052_s8] sm:$0xff]  ;;  %v1054_v22 = vld [vmem:[%s1052_s8 + $0x8] sm:$0xff]  ;;  %v1055_v58 = vld [vmem:[%s1052_s8 + $0x10] sm:$0xff]  ;;  %s2321_s8 = smul.u32 24, %s1293_s1 }
 0x144   : > { %v1056_v20 = vadd.f32 %v1053_v18, %v1000_v13  ;;  %v2467_v23 = vpop.f32.mrf.mxu1  ;;  %v1063_v24 = vadd.f32 %v1054_v22, %v1002_v14  ;;  %v1179_v8 = vld [vmem:[%s1178_s20] sm:$0xff]  ;;  %v1180_v15 = vld [vmem:[%s1178_s20 + $0x8] sm:$0xff] }
 0x145   : > { %s1297_s17 = scalar_lea.vmem [#allocation3], %s2321_s8 }
 0x146   : > { %v2267_v60 = vmul.f32 -1.442695, %v1056_v20  ;;  %v2268_v26 = vmul.f32 -1.442695, %v1063_v24 }
 0x148   : > { %2748 = vpow2.f32 %v2267_v60 }
 0x149   : > { %2750 = vpow2.f32 %v2268_v26 }
 0x155   : > { %v2749_v62 = vpop.eup %2748 }
 0x156   : > { %v1060_v30 = vadd.f32 1.0, %v2749_v62  ;;  %v2751_v32 = vpop.eup %2750  ;;  %v1181_v62 = vld [vmem:[%s1178_s20 + $0x10] sm:$0xff]  ;;  %s1444_s20 = ssub.s32 4, %s2955_s24 }
 0x157   : > { %v1067_v54 = vadd.f32 1.0, %v2751_v32 }
 0x158   : > { %2752 = vrcp.f32 %v1060_v30 }
 0x159   : > { %2754 = vrcp.f32 %v1067_v54 }
 0x165   : > { %v2753_v56 = vpop.eup %2752 }
 0x166   : > { %v1077_v57 = vmul.f32 %v2753_v56, %v1076_v55  ;;  %v2755_v61 = vpop.eup %2754 }
 0x167   : > { %v1080_v63 = vsub.f32 1.0, %v2755_v61  ;;  %v1082_v4 = vmul.f32 0.0, %v2755_v61 }
 0x168   : > { %v1078_v59 = vadd.f32 %v1077_v57, %v1055_v58 }
 0x16a   : > { %2756 = vtanh.f32 %v1078_v59 }
 0x177   : > { %v2757_v1 = vpop.eup %2756 }
 0x178   : > { %v1081_v2 = vmul.f32 %v2757_v1, %v1080_v63  ;;  %v1298_v63 = vld [vmem:[%s1297_s17] sm:$0xff] }
 0x17a   : > { %v3355_v5 = vadd.f32 %v1082_v4, %v1081_v2 }
 0x17c   : > { %1087 = vst [vmem:[%s1086_s27] sm:$0xff] %v3355_v5  ;;  %v1091_v6 = vpack.c.bf16 %v3355_v5, %v3355_v5  ;;  %s2323_s27 = sadd.s32 24, %s3492_s15 }
 0x17d   : > { %s1411_s11 = sshra.s32 %s2323_s27, 3 }
 0x17e   : > { %1125 = vmatmul.mubr.bf16.vlgmr.msra.gmra.mxu0 %v1091_v6  ;;  %2485 = vmatmul.mubr.bf16.vlgmr.msra.gmra.mxu1 %v1091_v6  ;;  %s2324_s29 = smul.u32 24, %s1411_s11 }
 0x17f   : > { %1212 = vmatpush1.bf16.msra.mxu0 %v3156_v27  ;;  %2489 = vmatpush3.bf16.msra.mxu1 %v3179_v34 }
 0x180   : > { %1213 = vmatprep.subr.bf16.mxu0 %v3160_v28  ;;  %2490 = vmatprep.subr.bf16.mxu1 %v2970_v33  ;;  %s1415_s16 = scalar_lea.vmem [#allocation3], %s2324_s29 }
 0x181   : > { %1243 = vmatprep.mubr.bf16.mxu0 %v2969_v0  ;;  %2504 = vmatprep.mubr.msk.bf16.mxu1 %vm2971_vm0, %v2970_v33 }
 0x183   : > { %1214 = vmatpush1.bf16.msra.mxu0 %v3163_v29  ;;  %2491 = vmatpush3.bf16.msra.mxu1 %v3191_v37 }
 0x184   : > { %1215 = vmatprep.subr.bf16.mxu0 %v3171_v31  ;;  %2492 = vmatprep.subr.bf16.mxu1 %v2970_v33 }
 0x187   : > { %1216 = vmatpush1.bf16.msra.mxu0 %v3183_v35  ;;  %2493 = vmatpush3.bf16.msra.mxu1 %v3208_v41 }
 0x188   : > { %1217 = vmatprep.subr.bf16.mxu0 %v3187_v36  ;;  %2494 = vmatprep.subr.bf16.mxu1 %v2970_v33 }
 0x18b   : > { %1218 = vmatpush1.bf16.msra.mxu0 %v3197_v38  ;;  %2495 = vmatpush3.bf16.msra.mxu1 %v3223_v44 }
 0x18c   : > { %1219 = vmatprep.subr.bf16.mxu0 %v3204_v40  ;;  %2496 = vmatprep.subr.bf16.mxu1 %v2970_v33 }
 0x18f   : > { %1220 = vmatpush1.bf16.msra.mxu0 %v3213_v42  ;;  %2497 = vmatpush3.bf16.msra.mxu1 %v3237_v47 }
 0x190   : > { %1221 = vmatprep.subr.bf16.mxu0 %v3217_v43  ;;  %2498 = vmatprep.subr.bf16.mxu1 %v2970_v33 }
 0x193   : > { %1222 = vmatpush1.bf16.msra.mxu0 %v3229_v45  ;;  %2499 = vmatpush3.bf16.msra.mxu1 %v3250_v50 }
 0x194   : > { %1223 = vmatprep.subr.bf16.mxu0 %v3233_v46  ;;  %2500 = vmatprep.subr.bf16.mxu1 %v2970_v33 }
 0x197   : > { %1224 = vmatpush1.bf16.msra.mxu0 %v3242_v48  ;;  %2501 = vmatpush3.bf16.msra.mxu1 %v3261_v52 }
 0x198   : > { %1225 = vmatprep.subr.bf16.mxu0 %v3246_v49  ;;  %2502 = vmatprep.subr.bf16.mxu1 %v2970_v33 }
 0x19b   : > { %1226 = vmatpush1.bf16.msra.mxu0 %v3255_v51  ;;  %2503 = vmatpush3.bf16.msra.mxu1 %v3268_v53 }
 0x19c   : > { %1329 = vmatprep.subr.bf16.mxu0 %v3152_v25  ;;  %2508 = vmatprep.subr.bf16.mxu1 %v2970_v33 }
 0x23e   : > { %v1126_v7 = vpop.f32.mrf.mxu0  ;;  %v1167_v9 = vpop.f32.mrf.mxu1 }
 0x23f   : > { %v1182_v10 = vadd.f32 %v1179_v8, %v1126_v7  ;;  %v1196_v23 = vadd.f32 %v3346_v39, %v1167_v9  ;;  %v1299_v9 = vld [vmem:[%s1297_s17 + $0x8] sm:$0xff] }
 0x240   : > { %v1128_v3 = vpop.f32.mrf.mxu0  ;;  %v2486_v11 = vpop.f32.mrf.mxu1 }
 0x241   : > { %v2273_v12 = vmul.f32 -1.442695, %v1182_v10  ;;  %v1189_v18 = vadd.f32 %v1180_v15, %v1128_v3 }
 0x242   : > { %v1130_v13 = vpop.f32.mrf.mxu0  ;;  %v1170_v14 = vpop.f32.mrf.mxu1 }
 0x243   : > { %2758 = vpow2.f32 %v2273_v12  ;;  %v2274_v19 = vmul.f32 -1.442695, %v1189_v18 }
 0x244   : > { %v1131_v16 = vpop.f32.mrf.mxu0  ;;  %v2487_v17 = vpop.f32.mrf.mxu1 }
 0x245   : > { %2760 = vpow2.f32 %v2274_v19 }
 0x250   : > { %v2759_v20 = vpop.eup %2758 }
 0x251   : > { %v1186_v21 = vadd.f32 1.0, %v2759_v20  ;;  %v1300_v20 = vld [vmem:[%s1297_s17 + $0x10] sm:$0xff]  ;;  %s2337_s17 = smul.u32 4294967272, %s2955_s24 }
 0x252   : > { %v2761_v60 = vpop.eup %2760 }
 0x253   : > { %2762 = vrcp.f32 %v1186_v21  ;;  %v1193_v22 = vadd.f32 1.0, %v2761_v60 }
 0x255   : > { %2764 = vrcp.f32 %v1193_v22 }
 0x260   : > { %v2763_v24 = vpop.eup %2762 }
 0x261   : > { %v1197_v26 = vmul.f32 %v2763_v24, %v1196_v23 }
 0x262   : > { %v2765_v32 = vpop.eup %2764 }
 0x263   : > { %v1198_v30 = vadd.f32 %v1197_v26, %v1181_v62  ;;  %v1200_v54 = vsub.f32 1.0, %v2765_v32  ;;  %v1202_v57 = vmul.f32 %v2765_v32, %v3355_v5 }
 0x265   : > { %2766 = vtanh.f32 %v1198_v30 }
 0x272   : > { %v2767_v55 = vpop.eup %2766 }
 0x273   : > { %v1201_v56 = vmul.f32 %v2767_v55, %v1200_v54  ;;  %v1416_v54 = vld [vmem:[%s1415_s16] sm:$0xff] }
 0x275   : > { %v3403_v58 = vadd.f32 %v1202_v57, %v1201_v56 }
 0x277   : > { %2276 = vst [vmem:[%s2084_s12 + $0x8] sm:$0xff] %v3403_v58  ;;  %v1210_v59 = vpack.c.bf16 %v3403_v58, %v3403_v58  ;;  %s3543_s12 = sshll.u32 %s1444_s20, 3 }
 0x278   : > { %s1529_s13 = sshra.s32 %s3543_s12, 3  ;;  %s1560_s8 = scalar_lea.vmem %s3350_s21, %s3543_s12 [#allocation8] }
 0x279   : > { %1244 = vmatmul.mubr.bf16.vlgmr.msra.gmra.mxu0 %v1210_v59  ;;  %2505 = vmatmul.mubr.bf16.vlgmr.msra.gmra.mxu1 %v1210_v59  ;;  %s2325_s18 = smul.u32 24, %s1529_s13 }
 0x27a   : > { %1330 = vmatpush1.bf16.msra.mxu0 %v3156_v27  ;;  %2509 = vmatpush3.bf16.msra.mxu1 %v3179_v34 }
 0x27b   : > { %1331 = vmatprep.subr.bf16.mxu0 %v3160_v28  ;;  %2510 = vmatprep.subr.bf16.mxu1 %v2970_v33  ;;  %s1533_s1 = scalar_lea.vmem [#allocation3], %s2325_s18 }
 0x27c   : > { %1361 = vmatprep.mubr.bf16.mxu0 %v2969_v0  ;;  %2524 = vmatprep.mubr.msk.bf16.mxu1 %vm2971_vm0, %v2970_v33 }
 0x27e   : > { %1332 = vmatpush1.bf16.msra.mxu0 %v3163_v29  ;;  %2511 = vmatpush3.bf16.msra.mxu1 %v3191_v37 }
 0x27f   : > { %1333 = vmatprep.subr.bf16.mxu0 %v3171_v31  ;;  %2512 = vmatprep.subr.bf16.mxu1 %v2970_v33 }
 0x282   : > { %1334 = vmatpush1.bf16.msra.mxu0 %v3183_v35  ;;  %2513 = vmatpush3.bf16.msra.mxu1 %v3208_v41 }
 0x283   : > { %1335 = vmatprep.subr.bf16.mxu0 %v3187_v36  ;;  %2514 = vmatprep.subr.bf16.mxu1 %v2970_v33 }
 0x286   : > { %1336 = vmatpush1.bf16.msra.mxu0 %v3197_v38  ;;  %2515 = vmatpush3.bf16.msra.mxu1 %v3223_v44 }
 0x287   : > { %1337 = vmatprep.subr.bf16.mxu0 %v3204_v40  ;;  %2516 = vmatprep.subr.bf16.mxu1 %v2970_v33 }
 0x28a   : > { %1338 = vmatpush1.bf16.msra.mxu0 %v3213_v42  ;;  %2517 = vmatpush3.bf16.msra.mxu1 %v3237_v47 }
 0x28b   : > { %1339 = vmatprep.subr.bf16.mxu0 %v3217_v43  ;;  %2518 = vmatprep.subr.bf16.mxu1 %v2970_v33 }
 0x28e   : > { %1340 = vmatpush1.bf16.msra.mxu0 %v3229_v45  ;;  %2519 = vmatpush3.bf16.msra.mxu1 %v3250_v50 }
 0x28f   : > { %1341 = vmatprep.subr.bf16.mxu0 %v3233_v46  ;;  %2520 = vmatprep.subr.bf16.mxu1 %v2970_v33 }
 0x292   : > { %1342 = vmatpush1.bf16.msra.mxu0 %v3242_v48  ;;  %2521 = vmatpush3.bf16.msra.mxu1 %v3261_v52 }
 0x293   : > { %1343 = vmatprep.subr.bf16.mxu0 %v3246_v49  ;;  %2522 = vmatprep.subr.bf16.mxu1 %v2970_v33 }
 0x296   : > { %1344 = vmatpush1.bf16.msra.mxu0 %v3255_v51  ;;  %2523 = vmatpush3.bf16.msra.mxu1 %v3268_v53 }
 0x297   : > { %1447 = vmatprep.subr.bf16.mxu0 %v3152_v25  ;;  %2528 = vmatprep.subr.bf16.mxu1 %v2970_v33 }
 0x339   : > { %v1245_v61 = vpop.f32.mrf.mxu0  ;;  %v1286_v1 = vpop.f32.mrf.mxu1 }
 0x33a   : > { %v1301_v2 = vadd.f32 %v1298_v63, %v1245_v61  ;;  %v1315_v17 = vadd.f32 %v3346_v39, %v1286_v1 }
 0x33b   : > { %v1247_v4 = vpop.f32.mrf.mxu0  ;;  %v2506_v5 = vpop.f32.mrf.mxu1 }
 0x33c   : > { %v2279_v6 = vmul.f32 -1.442695, %v1301_v2  ;;  %v1308_v11 = vadd.f32 %v1299_v9, %v1247_v4 }
 0x33d   : > { %v1249_v7 = vpop.f32.mrf.mxu0  ;;  %v1289_v8 = vpop.f32.mrf.mxu1 }
 0x33e   : > { %2768 = vpow2.f32 %v2279_v6  ;;  %v2280_v12 = vmul.f32 -1.442695, %v1308_v11 }
 0x33f   : > { %v1250_v10 = vpop.f32.mrf.mxu0  ;;  %v2507_v3 = vpop.f32.mrf.mxu1 }
 0x340   : > { %2770 = vpow2.f32 %v2280_v12  ;;  %v1418_v12 = vld [vmem:[%s1415_s16 + $0x10] sm:$0xff] }
 0x34b   : > { %v2769_v13 = vpop.eup %2768 }
 0x34c   : > { %v1305_v14 = vadd.f32 1.0, %v2769_v13 }
 0x34d   : > { %v2771_v15 = vpop.eup %2770 }
 0x34e   : > { %2772 = vrcp.f32 %v1305_v14  ;;  %v1312_v16 = vadd.f32 1.0, %v2771_v15 }
 0x350   : > { %2774 = vrcp.f32 %v1312_v16 }
 0x35b   : > { %v2773_v18 = vpop.eup %2772 }
 0x35c   : > { %v1316_v19 = vmul.f32 %v2773_v18, %v1315_v17 }
 0x35d   : > { %v2775_v60 = vpop.eup %2774 }
 0x35e   : > { %v1317_v21 = vadd.f32 %v1316_v19, %v1300_v20  ;;  %v1319_v22 = vsub.f32 1.0, %v2775_v60  ;;  %v1321_v26 = vmul.f32 %v2775_v60, %v3403_v58 }
 0x360   : > { %2776 = vtanh.f32 %v1317_v21 }
 0x36d   : > { %v2777_v23 = vpop.eup %2776 }
 0x36e   : > { %v1320_v24 = vmul.f32 %v2777_v23, %v1319_v22 }
 0x370   : > { %v3451_v62 = vadd.f32 %v1321_v26, %v1320_v24 }
 0x372   : > { %2282 = vst [vmem:[%s2090_s7 + $0x10] sm:$0xff] %v3451_v62  ;;  %v1328_v30 = vpack.c.bf16 %v3451_v62, %v3451_v62  ;;  %s2327_s7 = sadd.s32 40, %s2337_s17 }
 0x373   : > { %s1648_s27 = sshra.s32 %s2327_s7, 3 }
 0x374   : > { %1362 = vmatmul.mubr.bf16.vlgmr.msra.gmra.mxu0 %v1328_v30  ;;  %2525 = vmatmul.mubr.bf16.vlgmr.msra.gmra.mxu1 %v1328_v30  ;;  %s2328_s11 = smul.u32 24, %s1648_s27 }
 0x375   : > { %1448 = vmatpush1.bf16.msra.mxu0 %v3156_v27  ;;  %2529 = vmatpush3.bf16.msra.mxu1 %v3179_v34 }
 0x376   : > { %1449 = vmatprep.subr.bf16.mxu0 %v3160_v28  ;;  %2530 = vmatprep.subr.bf16.mxu1 %v2970_v33  ;;  %s1652_s29 = scalar_lea.vmem [#allocation3], %s2328_s11  ;;  %s2213_s11 = sshll.u32 %s3310_s30, 3 }
 0x377   : > { %1479 = vmatprep.mubr.bf16.mxu0 %v2969_v0  ;;  %2544 = vmatprep.mubr.msk.bf16.mxu1 %vm2971_vm0, %v2970_v33 }
 0x379   : > { %1450 = vmatpush1.bf16.msra.mxu0 %v3163_v29  ;;  %2531 = vmatpush3.bf16.msra.mxu1 %v3191_v37 }
 0x37a   : > { %1451 = vmatprep.subr.bf16.mxu0 %v3171_v31  ;;  %2532 = vmatprep.subr.bf16.mxu1 %v2970_v33 }
 0x37d   : > { %1452 = vmatpush1.bf16.msra.mxu0 %v3183_v35  ;;  %2533 = vmatpush3.bf16.msra.mxu1 %v3208_v41 }
 0x37e   : > { %1453 = vmatprep.subr.bf16.mxu0 %v3187_v36  ;;  %2534 = vmatprep.subr.bf16.mxu1 %v2970_v33 }
 0x381   : > { %1454 = vmatpush1.bf16.msra.mxu0 %v3197_v38  ;;  %2535 = vmatpush3.bf16.msra.mxu1 %v3223_v44 }
 0x382   : > { %1455 = vmatprep.subr.bf16.mxu0 %v3204_v40  ;;  %2536 = vmatprep.subr.bf16.mxu1 %v2970_v33 }
 0x385   : > { %1456 = vmatpush1.bf16.msra.mxu0 %v3213_v42  ;;  %2537 = vmatpush3.bf16.msra.mxu1 %v3237_v47 }
 0x386   : > { %1457 = vmatprep.subr.bf16.mxu0 %v3217_v43  ;;  %2538 = vmatprep.subr.bf16.mxu1 %v2970_v33 }
 0x389   : > { %1458 = vmatpush1.bf16.msra.mxu0 %v3229_v45  ;;  %2539 = vmatpush3.bf16.msra.mxu1 %v3250_v50 }
 0x38a   : > { %1459 = vmatprep.subr.bf16.mxu0 %v3233_v46  ;;  %2540 = vmatprep.subr.bf16.mxu1 %v2970_v33 }
 0x38d   : > { %1460 = vmatpush1.bf16.msra.mxu0 %v3242_v48  ;;  %2541 = vmatpush3.bf16.msra.mxu1 %v3261_v52 }
 0x38e   : > { %1461 = vmatprep.subr.bf16.mxu0 %v3246_v49  ;;  %2542 = vmatprep.subr.bf16.mxu1 %v2970_v33 }
 0x391   : > { %1462 = vmatpush1.bf16.msra.mxu0 %v3255_v51  ;;  %2543 = vmatpush3.bf16.msra.mxu1 %v3268_v53 }
 0x392   : > { %1566 = vmatprep.subr.bf16.mxu0 %v3152_v25  ;;  %2548 = vmatprep.subr.bf16.mxu1 %v2970_v33  ;;  %v1417_v25 = vld [vmem:[%s1415_s16 + $0x8] sm:$0xff]  ;;  %s2338_s16 = smul.u32 4294967256, %s2955_s24 }
 0x394   : > { %s2111_s18 = scalar_lea.vmem %s3350_s21, %s2338_s16 [#allocation8] }
 0x434   : > { %v1363_v32 = vpop.f32.mrf.mxu0  ;;  %v1404_v55 = vpop.f32.mrf.mxu1 }
 0x435   : > { %v1419_v56 = vadd.f32 %v1416_v54, %v1363_v32  ;;  %v1433_v10 = vadd.f32 %v3346_v39, %v1404_v55  ;;  %v3556_v32 = vld [vmem:[%s3118_s28 + $0xa8] ss:$12 sps:$4 sm:$0xff]   ;;  %v3560_v54 = vld [vmem:[%s3118_s28 + $0xb0] ss:$12 sps:$4 sm:$0xff]  }
 0x436   : > { %v1365_v57 = vpop.f32.mrf.mxu0  ;;  %v2526_v58 = vpop.f32.mrf.mxu1  ;;  %v3564_v55 = vld [vmem:[%s3118_s28 + $0x94] ss:$12 sps:$4 sm:$0xff]  }
 0x437   : > { %v2285_v59 = vmul.f32 -1.442695, %v1419_v56  ;;  %v1426_v4 = vadd.f32 %v1417_v25, %v1365_v57  ;;  %v3572_v56 = vld [vmem:[%s3118_s28 + $0x90] ss:$12 sps:$4 sm:$0xff]   ;;  %v3576_v57 = vld [vmem:[%s3118_s28 + $0x98] ss:$12 sps:$4 sm:$0xff]  }
 0x438   : > { %v1367_v61 = vpop.f32.mrf.mxu0  ;;  %v1407_v63 = vpop.f32.mrf.mxu1  ;;  %v3580_v58 = vld [vmem:[%s3118_s28 + $0x7c] ss:$12 sps:$4 sm:$0xff]   ;;  %v3598_v25 = vld [vmem:[%s3118_s28 + $0x60] ss:$12 sps:$4 sm:$0xff]  }
 0x439   : > { %2778 = vpow2.f32 %v2285_v59  ;;  %v2286_v5 = vmul.f32 -1.442695, %v1426_v4  ;;  %v3585_v59 = vld [vmem:[%s3118_s28 + $0x78] ss:$12 sps:$4 sm:$0xff]   ;;  %v3589_v61 = vld [vmem:[%s3118_s28 + $0x80] ss:$12 sps:$4 sm:$0xff]  }
 0x43a   : > { %v1368_v1 = vpop.f32.mrf.mxu0  ;;  %v2527_v2 = vpop.f32.mrf.mxu1  ;;  %v3593_v63 = vld [vmem:[%s3118_s28 + $0x64] ss:$12 sps:$4 sm:$0xff]   ;;  %v3611_v4 = vld [vmem:[%s3118_s28 + $0x48] ss:$12 sps:$4 sm:$0xff]  }
 0x43b   : > { %2780 = vpow2.f32 %v2286_v5  ;;  %v3602_v1 = vld [vmem:[%s3118_s28 + $0x68] ss:$12 sps:$4 sm:$0xff]   ;;  %v3606_v2 = vld [vmem:[%s3118_s28 + $0x4c] ss:$12 sps:$4 sm:$0xff]   ;;  %v3615_v5 = vld [vmem:[%s3118_s28 + $0x50] ss:$12 sps:$4 sm:$0xff]  }
 0x446   : > { %v2779_v6 = vpop.eup %2778 }
 0x447   : > { %v1423_v7 = vadd.f32 1.0, %v2779_v6  ;;  %v3619_v6 = vld [vmem:[%s3118_s28 + $0x34] ss:$12 sps:$4 sm:$0xff]  }
 0x448   : > { %v2781_v8 = vpop.eup %2780 }
 0x449   : > { %2782 = vrcp.f32 %v1423_v7  ;;  %v1430_v9 = vadd.f32 1.0, %v2781_v8  ;;  %v3624_v7 = vld [vmem:[%s3118_s28 + $0x30] ss:$12 sps:$4 sm:$0xff]   ;;  %v3628_v8 = vld [vmem:[%s3118_s28 + $0x38] ss:$12 sps:$4 sm:$0xff]  }
 0x44b   : > { %2784 = vrcp.f32 %v1430_v9  ;;  %v3632_v9 = vld [vmem:[%s3118_s28 + $0x1c] ss:$12 sps:$4 sm:$0xff]  }
 0x456   : > { %v2783_v3 = vpop.eup %2782 }
 0x457   : > { %v1434_v11 = vmul.f32 %v2783_v3, %v1433_v10  ;;  %v3637_v10 = vld [vmem:[%s3118_s28 + $0x18] ss:$12 sps:$4 sm:$0xff]   ;;  %v3641_v3 = vld [vmem:[%s3118_s28 + $0x20] ss:$12 sps:$4 sm:$0xff]  }
 0x458   : > { %v2785_v14 = vpop.eup %2784 }
 0x459   : > { %v1435_v13 = vadd.f32 %v1434_v11, %v1418_v12  ;;  %v1437_v15 = vsub.f32 1.0, %v2785_v14  ;;  %v1439_v18 = vmul.f32 %v2785_v14, %v3451_v62  ;;  %v3645_v11 = vld [vmem:[%s3118_s28 + $0x4] ss:$12 sps:$4 sm:$0xff]   ;;  %v3650_v12 = vld [vmem:[%s3118_s28] ss:$12 sps:$4 sm:$0xff]  }
 0x45b   : > { %2786 = vtanh.f32 %v1435_v13  ;;  %v3654_v13 = vld [vmem:[%s3118_s28 + $0x8] ss:$12 sps:$4 sm:$0xff]  }
 0x468   : > { %v2787_v16 = vpop.eup %2786 }
 0x469   : > { %v1438_v17 = vmul.f32 %v2787_v16, %v1437_v15  ;;  %v1653_v15 = vld [vmem:[%s1652_s29] sm:$0xff] }
 0x46b   : > { %v3499_v19 = vadd.f32 %v1439_v18, %v1438_v17 }
 0x46d   : > { %2288 = vst [vmem:[%s2095_s19 + $0x18] sm:$0xff] %v3499_v19  ;;  %v1446_v20 = vpack.c.bf16 %v3499_v19, %v3499_v19  ;;  %s2330_s19 = sadd.s32 48, %s2338_s16 }
 0x46e   : > { %s1767_s20 = sshra.s32 %s2330_s19, 3  ;;  %s424_s19 = scalar_lea.vmem %s3762_s6, %s2213_s11 }
 0x46f   : > { %1480 = vmatmul.mubr.bf16.vlgmr.msra.gmra.mxu0 %v1446_v20  ;;  %2545 = vmatmul.mubr.bf16.vlgmr.msra.gmra.mxu1 %v1446_v20  ;;  %s2331_s12 = smul.u32 24, %s1767_s20 }
 0x470   : > { %1567 = vmatpush1.bf16.msra.mxu0 %v3156_v27  ;;  %2549 = vmatpush3.bf16.msra.mxu1 %v3179_v34  ;;  %v3538_v27 = vld [vmem:[%s3118_s28 + $0xac] ss:$12 sps:$4 sm:$0xff]   ;;  %s2105_s28 = scalar_lea.vmem %s3350_s21, %s2337_s17 [#allocation8] }
 0x471   : > { %1568 = vmatprep.subr.bf16.mxu0 %v3160_v28  ;;  %2550 = vmatprep.subr.bf16.mxu1 %v2970_v33  ;;  %s1771_s13 = scalar_lea.vmem [#allocation3], %s2331_s12 }
 0x472   : > { %1598 = vmatprep.mubr.bf16.mxu0 %v2969_v0  ;;  %2564 = vmatprep.mubr.msk.bf16.mxu1 %vm2971_vm0, %v2970_v33 }
 0x474   : > { %1569 = vmatpush1.bf16.msra.mxu0 %v3163_v29  ;;  %2551 = vmatpush3.bf16.msra.mxu1 %v3191_v37  ;;  %v1534_v29 = vld [vmem:[%s1533_s1] sm:$0xff] }
 0x475   : > { %1570 = vmatprep.subr.bf16.mxu0 %v3171_v31  ;;  %2552 = vmatprep.subr.bf16.mxu1 %v2970_v33 }
 0x478   : > { %1571 = vmatpush1.bf16.msra.mxu0 %v3183_v35  ;;  %2553 = vmatpush3.bf16.msra.mxu1 %v3208_v41  ;;  %v1535_v41 = vld [vmem:[%s1533_s1 + $0x8] sm:$0xff] }
 0x479   : > { %1572 = vmatprep.subr.bf16.mxu0 %v3187_v36  ;;  %2554 = vmatprep.subr.bf16.mxu1 %v2970_v33 }
 0x47c   : > { %1573 = vmatpush1.bf16.msra.mxu0 %v3197_v38  ;;  %2555 = vmatpush3.bf16.msra.mxu1 %v3223_v44 }
 0x47d   : > { %1574 = vmatprep.subr.bf16.mxu0 %v3204_v40  ;;  %2556 = vmatprep.subr.bf16.mxu1 %v2970_v33 }
 0x480   : > { %1575 = vmatpush1.bf16.msra.mxu0 %v3213_v42  ;;  %2557 = vmatpush3.bf16.msra.mxu1 %v3237_v47 }
 0x481   : > { %1576 = vmatprep.subr.bf16.mxu0 %v3217_v43  ;;  %2558 = vmatprep.subr.bf16.mxu1 %v2970_v33 }
 0x484   : > { %1577 = vmatpush1.bf16.msra.mxu0 %v3229_v45  ;;  %2559 = vmatpush3.bf16.msra.mxu1 %v3250_v50 }
 0x485   : > { %1578 = vmatprep.subr.bf16.mxu0 %v3233_v46  ;;  %2560 = vmatprep.subr.bf16.mxu1 %v2970_v33 }
 0x488   : > { %1579 = vmatpush1.bf16.msra.mxu0 %v3242_v48  ;;  %2561 = vmatpush3.bf16.msra.mxu1 %v3261_v52 }
 0x489   : > { %1580 = vmatprep.subr.bf16.mxu0 %v3246_v49  ;;  %2562 = vmatprep.subr.bf16.mxu1 %v2970_v33 }
 0x48c   : > { %1581 = vmatpush1.bf16.msra.mxu0 %v3255_v51  ;;  %2563 = vmatpush3.bf16.msra.mxu1 %v3268_v53  ;;  %v1536_v53 = vld [vmem:[%s1533_s1 + $0x10] sm:$0xff]  ;;  %s2339_s1 = smul.u32 4294967240, %s2955_s24  ;;  %s1943_s24 = scalar_lea.vmem (%p3058_p9), %s3761_s5, %s3492_s15 }
 0x48d   : > { %1685 = vmatprep.subr.bf16.mxu0 %v3538_v27  ;;  %2568 = vmatprep.subr.bf16.mxu1 %v2970_v33 }
 0x52f   : > { %v1481_v28 = vpop.f32.mrf.mxu0  ;;  %v1522_v31 = vpop.f32.mrf.mxu1 }
 0x530   : > { %v1537_v34 = vadd.f32 %v1534_v29, %v1481_v28  ;;  %v1551_v50 = vadd.f32 %v3346_v39, %v1522_v31  ;;  %v1654_v31 = vld [vmem:[%s1652_s29 + $0x8] sm:$0xff] }
 0x531   : > { %v1483_v35 = vpop.f32.mrf.mxu0  ;;  %v2546_v36 = vpop.f32.mrf.mxu1 }
 0x532   : > { %v2291_v37 = vmul.f32 -1.442695, %v1537_v34  ;;  %v1544_v44 = vadd.f32 %v1535_v41, %v1483_v35 }
 0x533   : > { %v1485_v38 = vpop.f32.mrf.mxu0  ;;  %v1525_v40 = vpop.f32.mrf.mxu1 }
 0x534   : > { %2788 = vpow2.f32 %v2291_v37  ;;  %v2292_v45 = vmul.f32 -1.442695, %v1544_v44 }
 0x535   : > { %v1486_v42 = vpop.f32.mrf.mxu0  ;;  %v2547_v43 = vpop.f32.mrf.mxu1 }
 0x536   : > { %2790 = vpow2.f32 %v2292_v45  ;;  %v1655_v45 = vld [vmem:[%s1652_s29 + $0x10] sm:$0xff]  ;;  %s2117_s29 = scalar_lea.vmem %s3350_s21, %s2339_s1 [#allocation8] }
 0x541   : > { %v2789_v46 = vpop.eup %2788 }
 0x542   : > { %v1541_v47 = vadd.f32 1.0, %v2789_v46 }
 0x543   : > { %v2791_v48 = vpop.eup %2790 }
 0x544   : > { %2792 = vrcp.f32 %v1541_v47  ;;  %v1548_v49 = vadd.f32 1.0, %v2791_v48 }
 0x546   : > { %2794 = vrcp.f32 %v1548_v49 }
 0x551   : > { %v2793_v51 = vpop.eup %2792 }
 0x552   : > { %v1552_v52 = vmul.f32 %v2793_v51, %v1551_v50 }
 0x553   : > { %v2795_v60 = vpop.eup %2794 }
 0x554   : > { %v1553_v21 = vadd.f32 %v1552_v52, %v1536_v53  ;;  %v1555_v22 = vsub.f32 1.0, %v2795_v60  ;;  %v1557_v26 = vmul.f32 %v2795_v60, %v3499_v19 }
 0x556   : > { %2796 = vtanh.f32 %v1553_v21  ;;  %v1772_v21 = vld [vmem:[%s1771_s13] sm:$0xff] }
 0x563   : > { %v2797_v23 = vpop.eup %2796 }
 0x564   : > { %v1556_v24 = vmul.f32 %v2797_v23, %v1555_v22 }
 0x566   : > { %v3550_v62 = vadd.f32 %v1557_v26, %v1556_v24 }
 0x568   : > { %1561 = vst [vmem:[%s1560_s8] sm:$0xff] %v3550_v62  ;;  %v1565_v30 = vpack.c.bf16 %v3550_v62, %v3550_v62  ;;  %s2333_s8 = sadd.s32 56, %s2339_s1 }
 0x569   : > { %s1886_s17 = sshra.s32 %s2333_s8, 3 }
 0x56a   : > { %1599 = vmatmul.mubr.bf16.vlgmr.msra.gmra.mxu0 %v1565_v30  ;;  %2565 = vmatmul.mubr.bf16.vlgmr.msra.gmra.mxu1 %v1565_v30  ;;  %s2334_s7 = smul.u32 24, %s1886_s17 }
 0x56b   : > { %1686 = vmatpush1.bf16.msra.mxu0 %v3556_v32  ;;  %2569 = vmatpush3.bf16.msra.mxu1 %v3560_v54 }
 0x56c   : > { %1687 = vmatprep.subr.bf16.mxu0 %v3564_v55  ;;  %2570 = vmatprep.subr.bf16.mxu1 %v2970_v33  ;;  %s1890_s27 = scalar_lea.vmem [#allocation3], %s2334_s7 }
 0x56d   : > { %1717 = vmatprep.mubr.bf16.mxu0 %v2969_v0  ;;  %2584 = vmatprep.mubr.msk.bf16.mxu1 %vm2971_vm0, %v2970_v33 }
 0x56f   : > { %1688 = vmatpush1.bf16.msra.mxu0 %v3572_v56  ;;  %2571 = vmatpush3.bf16.msra.mxu1 %v3576_v57 }
 0x570   : > { %1689 = vmatprep.subr.bf16.mxu0 %v3580_v58  ;;  %2572 = vmatprep.subr.bf16.mxu1 %v2970_v33 }
 0x573   : > { %1690 = vmatpush1.bf16.msra.mxu0 %v3585_v59  ;;  %2573 = vmatpush3.bf16.msra.mxu1 %v3589_v61 }
 0x574   : > { %1691 = vmatprep.subr.bf16.mxu0 %v3593_v63  ;;  %2574 = vmatprep.subr.bf16.mxu1 %v2970_v33 }
 0x577   : > { %1692 = vmatpush1.bf16.msra.mxu0 %v3598_v25  ;;  %2575 = vmatpush3.bf16.msra.mxu1 %v3602_v1 }
 0x578   : > { %1693 = vmatprep.subr.bf16.mxu0 %v3606_v2  ;;  %2576 = vmatprep.subr.bf16.mxu1 %v2970_v33 }
 0x57b   : > { %1694 = vmatpush1.bf16.msra.mxu0 %v3611_v4  ;;  %2577 = vmatpush3.bf16.msra.mxu1 %v3615_v5 }
 0x57c   : > { %1695 = vmatprep.subr.bf16.mxu0 %v3619_v6  ;;  %2578 = vmatprep.subr.bf16.mxu1 %v2970_v33 }
 0x57f   : > { %1696 = vmatpush1.bf16.msra.mxu0 %v3624_v7  ;;  %2579 = vmatpush3.bf16.msra.mxu1 %v3628_v8 }
 0x580   : > { %1697 = vmatprep.subr.bf16.mxu0 %v3632_v9  ;;  %2580 = vmatprep.subr.bf16.mxu1 %v2970_v33 }
 0x583   : > { %1698 = vmatpush1.bf16.msra.mxu0 %v3637_v10  ;;  %2581 = vmatpush3.bf16.msra.mxu1 %v3641_v3 }
 0x584   : > { %1699 = vmatprep.subr.bf16.mxu0 %v3645_v11  ;;  %2582 = vmatprep.subr.bf16.mxu1 %v2970_v33 }
 0x587   : > { %1700 = vmatpush1.bf16.msra.mxu0 %v3650_v12  ;;  %2583 = vmatpush3.bf16.msra.mxu1 %v3654_v13 }
 0x588   : > { %1804 = vmatprep.subr.bf16.mxu0 %v3538_v27  ;;  %2588 = vmatprep.subr.bf16.mxu1 %v2970_v33 }
 0x62a   : > { %v1600_v14 = vpop.f32.mrf.mxu0  ;;  %v1641_v16 = vpop.f32.mrf.mxu1 }
 0x62b   : > { %v1656_v17 = vadd.f32 %v1653_v15, %v1600_v14  ;;  %v1670_v42 = vadd.f32 %v3346_v39, %v1641_v16 }
 0x62c   : > { %v1602_v18 = vpop.f32.mrf.mxu0  ;;  %v2566_v19 = vpop.f32.mrf.mxu1 }
 0x62d   : > { %v2295_v20 = vmul.f32 -1.442695, %v1656_v17  ;;  %v1663_v35 = vadd.f32 %v1654_v31, %v1602_v18  ;;  %v1892_v19 = vld [vmem:[%s1890_s27 + $0x8] sm:$0xff] }
 0x62e   : > { %v1604_v28 = vpop.f32.mrf.mxu0  ;;  %v1644_v29 = vpop.f32.mrf.mxu1 }
 0x62f   : > { %2798 = vpow2.f32 %v2295_v20  ;;  %v2296_v36 = vmul.f32 -1.442695, %v1663_v35 }
 0x630   : > { %v1605_v27 = vpop.f32.mrf.mxu0  ;;  %v2567_v34 = vpop.f32.mrf.mxu1 }
 0x631   : > { %2800 = vpow2.f32 %v2296_v36 }
 0x63c   : > { %v2799_v37 = vpop.eup %2798 }
 0x63d   : > { %v1660_v38 = vadd.f32 1.0, %v2799_v37  ;;  %v2852_v37 = vld [vmem:[%s3343_s14] ss:$0 sm:$0xff] }
 0x63e   : > { %v2801_v40 = vpop.eup %2800 }
 0x63f   : > { %2802 = vrcp.f32 %v1660_v38  ;;  %v1667_v41 = vadd.f32 1.0, %v2801_v40 }
 0x641   : > { %2804 = vrcp.f32 %v1667_v41 }
 0x64c   : > { %v2803_v43 = vpop.eup %2802 }
 0x64d   : > { %v1671_v44 = vmul.f32 %v2803_v43, %v1670_v42  ;;  %v1893_v42 = vld [vmem:[%s1890_s27 + $0x10] sm:$0xff] }
 0x64e   : > { %v2805_v47 = vpop.eup %2804 }
 0x64f   : > { %v1672_v46 = vadd.f32 %v1671_v44, %v1655_v45  ;;  %v1674_v48 = vsub.f32 1.0, %v2805_v47  ;;  %v1676_v51 = vmul.f32 %v2805_v47, %v3550_v62 }
 0x651   : > { %2806 = vtanh.f32 %v1672_v46 }
 0x65e   : > { %v2807_v49 = vpop.eup %2806 }
 0x65f   : > { %v1675_v50 = vmul.f32 %v2807_v49, %v1674_v48 }
 0x661   : > { %v3667_v52 = vadd.f32 %v1676_v51, %v1675_v50 }
 0x663   : > { %2298 = vst [vmem:[%s2105_s28 + $0x28] sm:$0xff] %v3667_v52  ;;  %v1684_v53 = vpack.c.bf16 %v3667_v52, %v3667_v52 }
 0x665   : > { %1718 = vmatmul.mubr.bf16.vlgmr.msra.gmra.mxu0 %v1684_v53  ;;  %2585 = vmatmul.mubr.bf16.vlgmr.msra.gmra.mxu1 %v1684_v53 }
 0x666   : > { %1805 = vmatpush1.bf16.msra.mxu0 %v3556_v32  ;;  %2589 = vmatpush3.bf16.msra.mxu1 %v3560_v54 }
 0x667   : > { %1806 = vmatprep.subr.bf16.mxu0 %v3564_v55  ;;  %2590 = vmatprep.subr.bf16.mxu1 %v2970_v33 }
 0x668   : > { %1836 = vmatprep.mubr.bf16.mxu0 %v2969_v0  ;;  %2604 = vmatprep.mubr.msk.bf16.mxu1 %vm2971_vm0, %v2970_v33 }
 0x66a   : > { %1807 = vmatpush1.bf16.msra.mxu0 %v3572_v56  ;;  %2591 = vmatpush3.bf16.msra.mxu1 %v3576_v57 }
 0x66b   : > { %1808 = vmatprep.subr.bf16.mxu0 %v3580_v58  ;;  %2592 = vmatprep.subr.bf16.mxu1 %v2970_v33 }
 0x66e   : > { %1809 = vmatpush1.bf16.msra.mxu0 %v3585_v59  ;;  %2593 = vmatpush3.bf16.msra.mxu1 %v3589_v61 }
 0x66f   : > { %1810 = vmatprep.subr.bf16.mxu0 %v3593_v63  ;;  %2594 = vmatprep.subr.bf16.mxu1 %v2970_v33 }
 0x672   : > { %1811 = vmatpush1.bf16.msra.mxu0 %v3598_v25  ;;  %2595 = vmatpush3.bf16.msra.mxu1 %v3602_v1 }
 0x673   : > { %1812 = vmatprep.subr.bf16.mxu0 %v3606_v2  ;;  %2596 = vmatprep.subr.bf16.mxu1 %v2970_v33  ;;  %v1774_v2 = vld [vmem:[%s1771_s13 + $0x10] sm:$0xff] }
 0x676   : > { %1813 = vmatpush1.bf16.msra.mxu0 %v3611_v4  ;;  %2597 = vmatpush3.bf16.msra.mxu1 %v3615_v5 }
 0x677   : > { %1814 = vmatprep.subr.bf16.mxu0 %v3619_v6  ;;  %2598 = vmatprep.subr.bf16.mxu1 %v2970_v33 }
 0x67a   : > { %1815 = vmatpush1.bf16.msra.mxu0 %v3624_v7  ;;  %2599 = vmatpush3.bf16.msra.mxu1 %v3628_v8 }
 0x67b   : > { %1816 = vmatprep.subr.bf16.mxu0 %v3632_v9  ;;  %2600 = vmatprep.subr.bf16.mxu1 %v2970_v33 }
 0x67e   : > { %1817 = vmatpush1.bf16.msra.mxu0 %v3637_v10  ;;  %2601 = vmatpush3.bf16.msra.mxu1 %v3641_v3 }
 0x67f   : > { %1818 = vmatprep.subr.bf16.mxu0 %v3645_v11  ;;  %2602 = vmatprep.subr.bf16.mxu1 %v2970_v33  ;;  %v1773_v33 = vld [vmem:[%s1771_s13 + $0x8] sm:$0xff]  ;;  %v1891_v11 = vld [vmem:[%s1890_s27] sm:$0xff] }
 0x682   : > { %1819 = vmatpush1.bf16.msra.mxu0 %v3650_v12  ;;  %2603 = vmatpush3.bf16.msra.mxu1 %v3654_v13 }
 0x725   : > { %v1719_v0 = vpop.f32.mrf.mxu0  ;;  %v1760_v60 = vpop.f32.mrf.mxu1 }
 0x726   : > { %v1775_v22 = vadd.f32 %v1772_v21, %v1719_v0  ;;  %v1789_v63 = vadd.f32 %v3346_v39, %v1760_v60 }
 0x727   : > { %v1721_v23 = vpop.f32.mrf.mxu0  ;;  %v2586_v24 = vpop.f32.mrf.mxu1 }
 0x728   : > { %v2301_v26 = vmul.f32 -1.442695, %v1775_v22  ;;  %v1782_v55 = vadd.f32 %v1773_v33, %v1721_v23 }
 0x729   : > { %v1723_v62 = vpop.f32.mrf.mxu0  ;;  %v1763_v30 = vpop.f32.mrf.mxu1 }
 0x72a   : > { %2808 = vpow2.f32 %v2301_v26  ;;  %v2302_v56 = vmul.f32 -1.442695, %v1782_v55 }
 0x72b   : > { %v1724_v32 = vpop.f32.mrf.mxu0  ;;  %v2587_v54 = vpop.f32.mrf.mxu1 }
 0x72c   : > { %2810 = vpow2.f32 %v2302_v56 }
 0x737   : > { %v2809_v57 = vpop.eup %2808 }
 0x738   : > { %v1779_v58 = vadd.f32 1.0, %v2809_v57 }
 0x739   : > { %v2811_v59 = vpop.eup %2810 }
 0x73a   : > { %2812 = vrcp.f32 %v1779_v58  ;;  %v1786_v61 = vadd.f32 1.0, %v2811_v59 }
 0x73c   : > { %2814 = vrcp.f32 %v1786_v61 }
 0x747   : > { %v2813_v25 = vpop.eup %2812 }
 0x748   : > { %v1790_v1 = vmul.f32 %v2813_v25, %v1789_v63 }
 0x749   : > { %v2815_v5 = vpop.eup %2814 }
 0x74a   : > { %v1791_v4 = vadd.f32 %v1790_v1, %v1774_v2  ;;  %v1793_v6 = vsub.f32 1.0, %v2815_v5  ;;  %v1795_v9 = vmul.f32 %v2815_v5, %v3667_v52 }
 0x74c   : > { %2816 = vtanh.f32 %v1791_v4 }
 0x759   : > { %v2817_v7 = vpop.eup %2816 }
 0x75a   : > { %v1794_v8 = vmul.f32 %v2817_v7, %v1793_v6 }
 0x75c   : > { %v1796_v10 = vadd.f32 %v1795_v9, %v1794_v8 }
 0x75e   : > { %2304 = vst [vmem:[%s2111_s18 + $0x30] sm:$0xff] %v1796_v10  ;;  %v1803_v3 = vpack.c.bf16 %v1796_v10, %v1796_v10 }
 0x760   : > { %1837 = vmatmul.mubr.bf16.vlgmr.msra.gmra.mxu0 %v1803_v3  ;;  %2605 = vmatmul.mubr.bf16.vlgmr.msra.gmra.mxu1 %v1803_v3 }
 0x820   : > { %v1838_v39 = vpop.f32.mrf.mxu0  ;;  %v1879_v12 = vpop.f32.mrf.mxu1 }
 0x821   : > { %v1894_v13 = vadd.f32 %v1891_v11, %v1838_v39  ;;  %v1908_v38 = vadd.f32 %v2852_v37, %v1879_v12 }
 0x822   : > { %v1840_v14 = vpop.f32.mrf.mxu0  ;;  %v2606_v15 = vpop.f32.mrf.mxu1 }
 0x823   : > { %v2307_v16 = vmul.f32 -1.442695, %v1894_v13  ;;  %v1901_v29 = vadd.f32 %v1892_v19, %v1840_v14 }
 0x824   : > { %v1842_v17 = vpop.f32.mrf.mxu0  ;;  %v1882_v18 = vpop.f32.mrf.mxu1 }
 0x825   : > { %2818 = vpow2.f32 %v2307_v16  ;;  %v2308_v31 = vmul.f32 -1.442695, %v1901_v29 }
 0x826   : > { %v1843_v20 = vpop.f32.mrf.mxu0  ;;  %v2607_v28 = vpop.f32.mrf.mxu1 }
 0x827   : > { %2820 = vpow2.f32 %v2308_v31 }
 0x832   : > { %v2819_v27 = vpop.eup %2818 }
 0x833   : > { %v1898_v34 = vadd.f32 1.0, %v2819_v27 }
 0x834   : > { %v2821_v35 = vpop.eup %2820 }
 0x835   : > { %2822 = vrcp.f32 %v1898_v34  ;;  %v1905_v36 = vadd.f32 1.0, %v2821_v35 }
 0x837   : > { %2824 = vrcp.f32 %v1905_v36 }
 0x842   : > { %v2823_v40 = vpop.eup %2822 }
 0x843   : > { %v1909_v41 = vmul.f32 %v2823_v40, %v1908_v38 }
 0x844   : > { %v2825_v44 = vpop.eup %2824 }
 0x845   : > { %v1910_v43 = vadd.f32 %v1909_v41, %v1893_v42  ;;  %v1912_v45 = vsub.f32 1.0, %v2825_v44  ;;  %v1914_v48 = vmul.f32 %v2825_v44, %v1796_v10 }
 0x847   : > { %2826 = vtanh.f32 %v1910_v43 }
 0x854   : > { %v2827_v46 = vpop.eup %2826 }
 0x855   : > { %v1913_v47 = vmul.f32 %v2827_v46, %v1912_v45  ;;  %1934 = sbr.rel (!%p3058_p9) target bundleno = 2149 (0x865), region = 60 }
 0x857   : > { %v1915_v49 = vadd.f32 %v1914_v48, %v1913_v47 }
 0x859   : > { %2310 = vst [vmem:[%s2117_s29 + $0x38] sm:$0xff] %v1915_v49  ;;  %1923 = vst [vmem:[%s424_s19] sm:$0xff] %v1915_v49 }
 0x860   : > { %v1986_v50 = vld [vmem:[%s3350_s21] sm:$0xff]  ;;  %v1988_v51 = vld [vmem:[%s3350_s21 + $0x8] sm:$0xff]  ;;  %v1990_v52 = vld [vmem:[%s3350_s21 + $0x10] sm:$0xff] }
 0x861   : > { %1987 = vst [vmem:[%s1943_s24] sm:$0xff] %v1986_v50  ;;  %1989 = vst [vmem:[%s1943_s24 + $0x10] sm:$0xff] %v1988_v51  ;;  %v1992_v53 = vld [vmem:[%s3350_s21 + $0x18] sm:$0xff]  ;;  %v1994_v0 = vld [vmem:[%s3350_s21 + $0x20] sm:$0xff] }
 0x862   : > { %1991 = vst [vmem:[%s1943_s24 + $0x20] sm:$0xff] %v1990_v52  ;;  %v1996_v21 = vld [vmem:[%s3350_s21 + $0x28] sm:$0xff]  ;;  %1993 = vst [vmem:[%s1943_s24 + $0x30] sm:$0xff] %v1992_v53  ;;  %v1998_v60 = vld [vmem:[%s3350_s21 + $0x30] sm:$0xff] }
 0x863   : > { %1995 = vst [vmem:[%s1943_s24 + $0x40] sm:$0xff] %v1994_v0  ;;  %1997 = vst [vmem:[%s1943_s24 + $0x50] sm:$0xff] %v1996_v21  ;;  %v2000_v22 = vld [vmem:[%s3350_s21 + $0x38] sm:$0xff] }
 0x864   : > { %1999 = vst [vmem:[%s1943_s24 + $0x60] sm:$0xff] %v1998_v60  ;;  %2001 = vst [vmem:[%s1943_s24 + $0x70] sm:$0xff] %v2000_v22 }
 0x865 PF: > { %s23_s26 = sadd.s32 1, %s2963_s26   ;;  %s3772_s10 = sld [smem:[#allocation11_spill]] }
 0x866   : > { %p20_p9 = scmp.ge.s32.totalorder %s23_s26, 4   ;;  %s3773_s21 = smov %s2947_s22 }
 0x867   : > { %s3774_s22 = smov %s2951_s23  ;;  %s3775_s23 = smov %s3056_s9 }
 0x868   : > { %s3776_s24 = smov %s2959_s25  ;;  %22 = sbr.rel (!%p20_p9) target bundleno = 8 (0x8), region = 176 }
 0x86b   : > { %s3777_s25 = smov %s3772_s10 }
 0x86d   :  { %2027 = vsyncpa [#allocation5], 1 }
 0x86e   :  { %2029 = vsyncpa [#allocation5 + $0x1], 1 }
 0x86f   :  { %2030 = vsyncpa [#allocation7], 1 }
 0x870   :  { %2032 = vsyncpa [#allocation7 + $0x1], 1 }

</bundles_post_ra>
